<compile_context>
chip_gen: v7x
topology: tpu7x:2x2x1
jax: 0.10.0
libtpu: 0.0.40
codegen_flags: <defaults>
</compile_context>

<pallas_src>
import functools
import numpy as np
import jax
import jax.numpy as jnp
from jax import lax
from jax.experimental import pallas as pl
from jax.experimental.pallas import tpu as pltpu


# ---------------------------------------------------------------------------
# small in-kernel helpers
# ---------------------------------------------------------------------------
def _softmax_last(s, approx_recip):
    m = jnp.max(s, axis=-1, keepdims=True)
    e = jnp.exp(s - m)
    d = jnp.sum(e, axis=-1, keepdims=True)
    if approx_recip:
        # divide -> EUP reciprocal: frees the VALU slot (used only on the bf16 fast path)
        return e * pl.reciprocal(d, approx=True)
    return e / d


def _gelu_tanh(x):
    # TODO(synk): PyTorch nn.GELU() defaults to the exact erf form; erf lowering is not
    # guaranteed in Mosaic, so the tanh approximation (max abs diff ~1e-3) is used in
    # both the kernel and the reference below.
    c = 0.7978845608028654  # sqrt(2/pi)
    return 0.5 * x * (1.0 + jnp.tanh(c * (x + 0.044715 * x * x * x)))


# contract the last axis of both operands: A @ B.T without an explicit XLU transpose
_TRANS_B = (((1,), (1,)), ((), ()))


# ---------------------------------------------------------------------------
# the fused encoder-layer kernel (TB batch elements per grid step)
# ---------------------------------------------------------------------------
def _encoder_layer_kernel(src_ref,
                          wk_ref, bk_ref, router_ref,
                          wq2_ref, bq2_ref,
                          ak_ref, ck_ref, av_ref, cv_ref,
                          wo2_ref, bo2_ref,
                          bn1s_ref, bn1b_ref,
                          w1_ref, b1_ref, w2_ref, b2_ref,
                          bn2s_ref, bn2b_ref,
                          out_ref,
                          r_slab_ref, o_slab_ref,
                          *, n_heads, d_k, seq_len, batch_tile,
                          compute_dtype, approx_recip):
    f32 = jnp.float32
    cd = compute_dtype
    L, TB, H, dk = seq_len, batch_tile, n_heads, d_k
    dc = router_ref.shape[1]

    x = src_ref[...].astype(f32)            # (TB*L, D) slab; f32 copy kept for residual/BN
    x_c = x.astype(cd)

    # ---- shared linears over the whole flattened slab: one full-depth matmul each ----
    k_all = jnp.dot(x_c, wk_ref[...], preferred_element_type=f32) + bk_ref[...]   # (TB*L, Hdk)
    q2_all = jnp.dot(x_c, wq2_ref[...], preferred_element_type=f32) + bq2_ref[...]  # (TB*L, Hdk)

    # ---- routed (router) attention: per-head keys == values == W_K(src) ----
    # Per (batch, head) score/softmax/value matmuls are tiny and unavoidable, but each
    # head's r_h lands in the slab at its static lane offset so the to_out->K2/V2
    # projection below contracts over the FULL Hdk in one matmul each.
    # (For n_heads >= 8 switch these Python loops to lax.fori_loop(unroll=True).)
    for b in range(TB):
        kb = k_all[b * L:(b + 1) * L, :]
        for h in range(H):
            kh = kb[:, h * dk:(h + 1) * dk].astype(cd)                       # (L, dk)
            # scale d_k**-0.5 pre-folded into router_ref
            s1 = lax.dot_general(router_ref[h], kh, _TRANS_B,
                                 preferred_element_type=f32)                 # (dc, L)
            p1 = _softmax_last(s1, approx_recip)
            r_h = jnp.dot(p1.astype(cd), kh, preferred_element_type=f32)     # (dc, dk)
            r_slab_ref[b * dc:(b + 1) * dc, h * dk:(h + 1) * dk] = r_h

    r_all = r_slab_ref[...].astype(cd)                                       # (TB*dc, Hdk)
    # to_out folded into attn_2's W_K / W_V:  K2 = R @ A_K + c_K  (one K=Hdk matmul each)
    k2_all = jnp.dot(r_all, ak_ref[...], preferred_element_type=f32) + ck_ref[...]
    v2_all = jnp.dot(r_all, av_ref[...], preferred_element_type=f32) + cv_ref[...]

    # ---- attention 2: src attends to the routed summary ----
    # scale (d_model // n_heads)**-0.5 pre-folded into wq2 / bq2
    for b in range(TB):
        q2b = q2_all[b * L:(b + 1) * L, :]
        k2b = k2_all[b * dc:(b + 1) * dc, :]
        v2b = v2_all[b * dc:(b + 1) * dc, :]
        for h in range(H):
            qh = q2b[:, h * dk:(h + 1) * dk].astype(cd)                      # (L, dk)
            kh = k2b[:, h * dk:(h + 1) * dk].astype(cd)                      # (dc, dk)
            vh = v2b[:, h * dk:(h + 1) * dk].astype(cd)                      # (dc, dk)
            s2 = lax.dot_general(qh, kh, _TRANS_B, preferred_element_type=f32)  # (L, dc)
            p2 = _softmax_last(s2, approx_recip)
            oh = jnp.dot(p2.astype(cd), vh, preferred_element_type=f32)      # (L, dk)
            o_slab_ref[b * L:(b + 1) * L, h * dk:(h + 1) * dk] = oh

    # output projection over the whole (TB*L, Hdk) slab: one K=Hdk matmul
    src2 = jnp.dot(o_slab_ref[...].astype(cd), wo2_ref[...],
                   preferred_element_type=f32) + bo2_ref[...]                # (TB*L, D)

    # ---- residual + BatchNorm (eval: running stats folded to scale/bias) ----
    y1 = (x + src2) * bn1s_ref[...] + bn1b_ref[...]

    # ---- position-wise FFN + residual + BatchNorm ----
    h1 = jnp.dot(y1.astype(cd), w1_ref[...], preferred_element_type=f32) + b1_ref[...]
    h1 = _gelu_tanh(h1)
    ff = jnp.dot(h1.astype(cd), w2_ref[...], preferred_element_type=f32) + b2_ref[...]
    out = (y1 + ff) * bn2s_ref[...] + bn2b_ref[...]

    out_ref[...] = out.astype(out_ref.dtype)


# ---------------------------------------------------------------------------
# wrapper: constant fusion (under jit) + pallas_call
# ---------------------------------------------------------------------------
def _fold_and_call(src, params, *, n_heads, d_k, eps=1e-5,
                   compute_dtype=jnp.bfloat16, batch_tile=2,
                   approx_recip=None, vmem_limit_bytes=32 * 1024 * 1024):
    """src: (bs, q_len, d_model) -> (bs, q_len, d_model)."""
    bs, L, D = src.shape
    hdk = n_heads * d_k
    dc = params['router'].shape[1]
    f32 = jnp.float32
    cd = compute_dtype
    if approx_recip is None:
        approx_recip = (cd != jnp.float32)

    # batch tile: largest divisor of bs not exceeding the request.
    # Re-derive per chip: the (TB*L, d_ff) FFN activation + bf16 weights must fit VMEM
    # (64 MiB physical on v7x vs 128 MiB on v5e/v6e); also keep bs/TB even on v7x (2 TCs).
    TB = max(1, min(int(batch_tile), bs))
    while bs % TB:
        TB -= 1

    # -------- constant fusion (runs under jit -> fused/cached, not per-call host work) --
    scale1 = 1.0 / np.sqrt(d_k)             # routed sdp: (d_model_attn // n_heads)^-0.5
    scale2 = 1.0 / np.sqrt(D // n_heads)    # attn_2 sdp: (d_model // n_heads)^-0.5

    # matmul operands in compute dtype (bf16-in / f32-acc on the MXU); biases / BN in f32
    wk_t = params['Wk'].T.astype(cd)                                    # (D, Hdk)
    bk = params['bk'].reshape(1, hdk).astype(f32)
    router_s = (params['router'] * scale1).astype(cd)                   # (H, dc, dk)

    wq2_t = (params['Wq2'] * scale2).T.astype(cd)                       # (D, Hdk)
    bq2 = (params['bq2'] * scale2).reshape(1, hdk).astype(f32)

    # K2 = (R @ Wout1.T + bout1) @ Wk2.T + bk2 = R @ A_K + c_K   (same for V2)
    a_k = (params['Wout1'].T @ params['Wk2'].T).astype(cd)              # (Hdk, Hdk)
    c_k = (params['bout1'] @ params['Wk2'].T + params['bk2']).reshape(1, hdk).astype(f32)
    a_v = (params['Wout1'].T @ params['Wv2'].T).astype(cd)
    c_v = (params['bout1'] @ params['Wv2'].T + params['bv2']).reshape(1, hdk).astype(f32)

    wo2_t = params['Wout2'].T.astype(cd)                                # (Hdk, D)
    bo2 = params['bout2'].reshape(1, D).astype(f32)

    bn1_s = params['bn1_gamma'] / jnp.sqrt(params['bn1_var'] + eps)
    bn1_b = (params['bn1_beta'] - params['bn1_mean'] * bn1_s).reshape(1, D).astype(f32)
    bn1_s = bn1_s.reshape(1, D).astype(f32)
    bn2_s = params['bn2_gamma'] / jnp.sqrt(params['bn2_var'] + eps)
    bn2_b = (params['bn2_beta'] - params['bn2_mean'] * bn2_s).reshape(1, D).astype(f32)
    bn2_s = bn2_s.reshape(1, D).astype(f32)

    w1_t = params['W1'].T.astype(cd)                                    # (D, d_ff)
    b1 = params['b1'].reshape(1, -1).astype(f32)
    w2_t = params['W2'].T.astype(cd)                                    # (d_ff, D)
    b2 = params['b2'].reshape(1, D).astype(f32)

    consts = [wk_t, bk, router_s, wq2_t, bq2, a_k, c_k, a_v, c_v,
              wo2_t, bo2, bn1_s, bn1_b, w1_t, b1, w2_t, b2, bn2_s, bn2_b]

    def const_spec(a):
        # full-array block with a constant index_map -> stays VMEM-resident across the grid
        return pl.BlockSpec(a.shape, lambda i, _n=a.ndim: (0,) * _n)

    kernel = functools.partial(
        _encoder_layer_kernel, n_heads=n_heads, d_k=d_k, seq_len=L,
        batch_tile=TB, compute_dtype=cd, approx_recip=approx_recip)

    # flatten batch so the shared linears / FFN / BN run on one (TB*L, D) slab per step;
    # src stays in its native dtype (no host-side f32 copy) and is upcast in-kernel.
    src2d = src.reshape(bs * L, D)

    out = pl.pallas_call(
        kernel,
        out_shape=jax.ShapeDtypeStruct((bs * L, D), src.dtype),
        grid=(bs // TB,),
        in_specs=[pl.BlockSpec((TB * L, D), lambda i: (i, 0))]
                + [const_spec(a) for a in consts],
        out_specs=pl.BlockSpec((TB * L, D), lambda i: (i, 0)),
        scratch_shapes=[pltpu.VMEM((TB * dc, hdk), jnp.float32),   # routed-head slab
                        pltpu.VMEM((TB * L, hdk), jnp.float32)],   # attn-2-head slab
        compiler_params=pltpu.CompilerParams(
            dimension_semantics=("parallel",),     # megacore / 2-TC sharding on v7x
            vmem_limit_bytes=vmem_limit_bytes),    # keep <= ~48 MiB on v7x (64 MiB phys)
    )(src2d, *consts)
    return out.reshape(bs, L, D)


routed_tst_encoder_layer = jax.jit(
    _fold_and_call,
    static_argnames=("n_heads", "d_k", "eps", "compute_dtype", "batch_tile",
                     "approx_recip", "vmem_limit_bytes"))


# ---------------------------------------------------------------------------
# pure-numpy (float64) reference of the PyTorch forward (eval mode)
# ---------------------------------------------------------------------------
def _reference(src, p, n_heads, d_k, eps=1e-5):
    def sm(x):
        m = x.max(-1, keepdims=True)
        e = np.exp(x - m)
        return e / e.sum(-1, keepdims=True)

    def gelu(x):
        return 0.5 * x * (1.0 + np.tanh(0.7978845608028654 * (x + 0.044715 * x ** 3)))

    src = np.asarray(src, np.float64)
    p = {k: np.asarray(v, np.float64) for k, v in p.items()}
    bs, L, D = src.shape
    hdk = n_heads * d_k

    # router attention
    k = src @ p['Wk'].T + p['bk']                                        # (bs,L,Hdk)
    kh = k.reshape(bs, L, n_heads, d_k).transpose(0, 2, 3, 1)            # (bs,H,dk,L)
    vh = kh.transpose(0, 1, 3, 2)                                        # (bs,H,L,dk)
    q = np.broadcast_to(p['router'][None], (bs,) + p['router'].shape)    # (bs,H,dc,dk)
    s1 = (q @ kh) * (d_k ** -0.5)
    r = sm(s1) @ vh                                                      # (bs,H,dc,dk)
    r_flat = r.transpose(0, 2, 1, 3).reshape(bs, -1, hdk)                # (bs,dc,Hdk)
    r_dm = r_flat @ p['Wout1'].T + p['bout1']                            # (bs,dc,D)

    # attn_2
    dc = r_dm.shape[1]
    scale2 = (D // n_heads) ** -0.5
    q2 = src @ p['Wq2'].T + p['bq2']
    k2 = r_dm @ p['Wk2'].T + p['bk2']
    v2 = r_dm @ p['Wv2'].T + p['bv2']
    q2h = q2.reshape(bs, L, n_heads, d_k).transpose(0, 2, 1, 3)          # (bs,H,L,dk)
    k2h = k2.reshape(bs, dc, n_heads, d_k).transpose(0, 2, 3, 1)         # (bs,H,dk,dc)
    v2h = v2.reshape(bs, dc, n_heads, d_k).transpose(0, 2, 1, 3)         # (bs,H,dc,dk)
    s2 = (q2h @ k2h) * scale2
    o2 = (sm(s2) @ v2h).transpose(0, 2, 1, 3).reshape(bs, L, hdk)
    src2 = o2 @ p['Wout2'].T + p['bout2']

    x = src + src2
    s = p['bn1_gamma'] / np.sqrt(p['bn1_var'] + eps)
    x = (x - p['bn1_mean']) * s + p['bn1_beta']
    h = gelu(x @ p['W1'].T + p['b1'])
    x = x + (h @ p['W2'].T + p['b2'])
    s = p['bn2_gamma'] / np.sqrt(p['bn2_var'] + eps)
    x = (x - p['bn2_mean']) * s + p['bn2_beta']
    return x


if __name__ == "__main__":
    # small shapes consistent with the module
    bs, q_len, d_model, n_heads, d_compress, d_ff = 2, 16, 32, 4, 8, 64
    d_k = d_model // n_heads
    hdk = n_heads * d_k

    key = jax.random.PRNGKey(0)
    ks = jax.random.split(key, 26)

    def lin(kw, kb, out_f, in_f):
        w = jax.random.normal(kw, (out_f, in_f), jnp.float32) / np.sqrt(in_f)
        b = jax.random.normal(kb, (out_f,), jnp.float32) * 0.1
        return w, b

    p = {}
    p['Wk'], p['bk'] = lin(ks[0], ks[1], hdk, d_model)
    p['router'] = jax.random.normal(ks[2], (n_heads, d_compress, d_k), jnp.float32)
    p['Wout1'], p['bout1'] = lin(ks[3], ks[4], d_model, hdk)
    p['Wq2'], p['bq2'] = lin(ks[5], ks[6], hdk, d_model)
    p['Wk2'], p['bk2'] = lin(ks[7], ks[8], hdk, d_model)
    p['Wv2'], p['bv2'] = lin(ks[9], ks[10], hdk, d_model)
    p['Wout2'], p['bout2'] = lin(ks[11], ks[12], d_model, hdk)
    p['W1'], p['b1'] = lin(ks[13], ks[14], d_ff, d_model)
    p['W2'], p['b2'] = lin(ks[15], ks[16], d_model, d_ff)
    p['bn1_gamma'] = 1.0 + 0.1 * jax.random.normal(ks[17], (d_model,), jnp.float32)
    p['bn1_beta'] = 0.1 * jax.random.normal(ks[18], (d_model,), jnp.float32)
    p['bn1_mean'] = 0.1 * jax.random.normal(ks[19], (d_model,), jnp.float32)
    p['bn1_var'] = jax.random.uniform(ks[20], (d_model,), jnp.float32, 0.5, 1.5)
    p['bn2_gamma'] = 1.0 + 0.1 * jax.random.normal(ks[21], (d_model,), jnp.float32)
    p['bn2_beta'] = 0.1 * jax.random.normal(ks[22], (d_model,), jnp.float32)
    p['bn2_mean'] = 0.1 * jax.random.normal(ks[23], (d_model,), jnp.float32)
    p['bn2_var'] = jax.random.uniform(ks[24], (d_model,), jnp.float32, 0.5, 1.5)

    src = jax.random.normal(ks[25], (bs, q_len, d_model), jnp.float32)

    ref = _reference(np.asarray(src), p, n_heads, d_k)

    # perf path: bf16 matmul operands / f32 accumulation, 2 batch elements per grid step,
    # approx softmax reciprocal (loose tolerance reflects bf16 operands only)
    out_fast = routed_tst_encoder_layer(src, p, n_heads=n_heads, d_k=d_k,
                                        compute_dtype=jnp.bfloat16, batch_tile=2)
    out_fast = jax.block_until_ready(out_fast)

    # verification path: full f32 math, 1 batch element per grid step (even grid for v7x)
    out_exact = routed_tst_encoder_layer(src, p, n_heads=n_heads, d_k=d_k,
                                         compute_dtype=jnp.float32, batch_tile=1)
    out_exact = jax.block_until_ready(out_exact)

    np.testing.assert_allclose(np.asarray(out_exact), ref, atol=5e-4, rtol=5e-4)
    np.testing.assert_allclose(np.asarray(out_fast), ref, atol=1e-1, rtol=1e-1)

    print("KERNEL_OK")
</pallas_src>

<mosaic_0001>
module attributes {stable_mosaic.version = 11 : i64} {
  func.func @_encoder_layer_kernel(%arg0: i32, %arg1: memref<32x32xf32, #tpu.memory_space<vmem>>, %arg2: memref<32x32xbf16, #tpu.memory_space<vmem>>, %arg3: memref<1x32xf32, #tpu.memory_space<vmem>>, %arg4: memref<4x8x8xbf16, #tpu.memory_space<vmem>>, %arg5: memref<32x32xbf16, #tpu.memory_space<vmem>>, %arg6: memref<1x32xf32, #tpu.memory_space<vmem>>, %arg7: memref<32x32xbf16, #tpu.memory_space<vmem>>, %arg8: memref<1x32xf32, #tpu.memory_space<vmem>>, %arg9: memref<32x32xbf16, #tpu.memory_space<vmem>>, %arg10: memref<1x32xf32, #tpu.memory_space<vmem>>, %arg11: memref<32x32xbf16, #tpu.memory_space<vmem>>, %arg12: memref<1x32xf32, #tpu.memory_space<vmem>>, %arg13: memref<1x32xf32, #tpu.memory_space<vmem>>, %arg14: memref<1x32xf32, #tpu.memory_space<vmem>>, %arg15: memref<32x64xbf16, #tpu.memory_space<vmem>>, %arg16: memref<1x64xf32, #tpu.memory_space<vmem>>, %arg17: memref<64x32xbf16, #tpu.memory_space<vmem>>, %arg18: memref<1x32xf32, #tpu.memory_space<vmem>>, %arg19: memref<1x32xf32, #tpu.memory_space<vmem>>, %arg20: memref<1x32xf32, #tpu.memory_space<vmem>>, %arg21: memref<32x32xf32, #tpu.memory_space<vmem>>, %arg22: memref<16x32xf32, #tpu.memory_space<vmem>>, %arg23: memref<32x32xf32, #tpu.memory_space<vmem>>) attributes {dimension_semantics = [#tpu.dimension_semantics<parallel>], iteration_bounds = array<i64: 1>, scalar_prefetch = 0 : i64, scratch_operands = 2 : i64, tpu.core_type = #tpu.core_type<tc>, window_params = [{transform_indices = @transform_0, window_bounds = array<i64: 32, 32>}, {pipeline_mode = #tpu.pipeline_mode<synchronous>, transform_indices = @transform_1, window_bounds = array<i64: 32, 32>}, {pipeline_mode = #tpu.pipeline_mode<synchronous>, transform_indices = @transform_2, window_bounds = array<i64: 1, 32>}, {pipeline_mode = #tpu.pipeline_mode<synchronous>, transform_indices = @transform_3, window_bounds = array<i64: 4, 8, 8>}, {pipeline_mode = #tpu.pipeline_mode<synchronous>, transform_indices = @transform_4, window_bounds = array<i64: 32, 32>}, {pipeline_mode = #tpu.pipeline_mode<synchronous>, transform_indices = @transform_5, window_bounds = array<i64: 1, 32>}, {pipeline_mode = #tpu.pipeline_mode<synchronous>, transform_indices = @transform_6, window_bounds = array<i64: 32, 32>}, {pipeline_mode = #tpu.pipeline_mode<synchronous>, transform_indices = @transform_7, window_bounds = array<i64: 1, 32>}, {pipeline_mode = #tpu.pipeline_mode<synchronous>, transform_indices = @transform_8, window_bounds = array<i64: 32, 32>}, {pipeline_mode = #tpu.pipeline_mode<synchronous>, transform_indices = @transform_9, window_bounds = array<i64: 1, 32>}, {pipeline_mode = #tpu.pipeline_mode<synchronous>, transform_indices = @transform_10, window_bounds = array<i64: 32, 32>}, {pipeline_mode = #tpu.pipeline_mode<synchronous>, transform_indices = @transform_11, window_bounds = array<i64: 1, 32>}, {pipeline_mode = #tpu.pipeline_mode<synchronous>, transform_indices = @transform_12, window_bounds = array<i64: 1, 32>}, {pipeline_mode = #tpu.pipeline_mode<synchronous>, transform_indices = @transform_13, window_bounds = array<i64: 1, 32>}, {pipeline_mode = #tpu.pipeline_mode<synchronous>, transform_indices = @transform_14, window_bounds = array<i64: 32, 64>}, {pipeline_mode = #tpu.pipeline_mode<synchronous>, transform_indices = @transform_15, window_bounds = array<i64: 1, 64>}, {pipeline_mode = #tpu.pipeline_mode<synchronous>, transform_indices = @transform_16, window_bounds = array<i64: 64, 32>}, {pipeline_mode = #tpu.pipeline_mode<synchronous>, transform_indices = @transform_17, window_bounds = array<i64: 1, 32>}, {pipeline_mode = #tpu.pipeline_mode<synchronous>, transform_indices = @transform_18, window_bounds = array<i64: 1, 32>}, {pipeline_mode = #tpu.pipeline_mode<synchronous>, transform_indices = @transform_19, window_bounds = array<i64: 1, 32>}, {transform_indices = @transform_20, window_bounds = array<i64: 32, 32>}]} {
    %c0 = arith.constant 0 : index
    %c0_0 = arith.constant 0 : index
    %0 = vector.load %arg1[%c0, %c0_0] : memref<32x32xf32, #tpu.memory_space<vmem>>, vector<32x32xf32>
    %1 = arith.truncf %0 : vector<32x32xf32> to vector<32x32xbf16>
    %c0_1 = arith.constant 0 : index
    %c0_2 = arith.constant 0 : index
    %2 = vector.load %arg2[%c0_1, %c0_2] : memref<32x32xbf16, #tpu.memory_space<vmem>>, vector<32x32xbf16>
    %cst = arith.constant dense<0.000000e+00> : vector<32x32xf32>
    %3 = tpu.matmul %1, %2, %cst {dimension_numbers = #tpu.dot_dimension_numbers<[1], [0], [0], [1], [0, 0, 1, 1], [], []>} : vector<32x32xbf16>, vector<32x32xbf16>, vector<32x32xf32> -> vector<32x32xf32>
    %c0_3 = arith.constant 0 : index
    %c0_4 = arith.constant 0 : index
    %4 = vector.load %arg3[%c0_3, %c0_4] : memref<1x32xf32, #tpu.memory_space<vmem>>, vector<1x32xf32>
    %5 = vector.broadcast %4 : vector<1x32xf32> to vector<32x32xf32>
    %6 = arith.addf %3, %5 : vector<32x32xf32>
    %c0_5 = arith.constant 0 : index
    %c0_6 = arith.constant 0 : index
    %7 = vector.load %arg5[%c0_5, %c0_6] : memref<32x32xbf16, #tpu.memory_space<vmem>>, vector<32x32xbf16>
    %cst_7 = arith.constant dense<0.000000e+00> : vector<32x32xf32>
    %8 = tpu.matmul %1, %7, %cst_7 {dimension_numbers = #tpu.dot_dimension_numbers<[1], [0], [0], [1], [0, 0, 1, 1], [], []>} : vector<32x32xbf16>, vector<32x32xbf16>, vector<32x32xf32> -> vector<32x32xf32>
    %c0_8 = arith.constant 0 : index
    %c0_9 = arith.constant 0 : index
    %9 = vector.load %arg6[%c0_8, %c0_9] : memref<1x32xf32, #tpu.memory_space<vmem>>, vector<1x32xf32>
    %10 = vector.broadcast %9 : vector<1x32xf32> to vector<32x32xf32>
    %11 = arith.addf %8, %10 : vector<32x32xf32>
    %12 = vector.extract_strided_slice %6 {offsets = [0, 0], sizes = [16, 32], strides = [1, 1]} : vector<32x32xf32> to vector<16x32xf32>
    %13 = vector.extract_strided_slice %12 {offsets = [0, 0], sizes = [16, 8], strides = [1, 1]} : vector<16x32xf32> to vector<16x8xf32>
    %14 = arith.truncf %13 : vector<16x8xf32> to vector<16x8xbf16>
    %c0_10 = arith.constant 0 : index
    %c0_11 = arith.constant 0 : index
    %c0_12 = arith.constant 0 : index
    %15 = vector.load %arg4[%c0_10, %c0_11, %c0_12] : memref<4x8x8xbf16, #tpu.memory_space<vmem>>, vector<1x8x8xbf16>
    %16 = vector.shape_cast %15 : vector<1x8x8xbf16> to vector<8x8xbf16>
    %cst_13 = arith.constant dense<0.000000e+00> : vector<8x16xf32>
    %17 = tpu.matmul %16, %14, %cst_13 {dimension_numbers = #tpu.dot_dimension_numbers<[1], [1], [0], [0], [0, 0, 1, 0], [], []>} : vector<8x8xbf16>, vector<16x8xbf16>, vector<8x16xf32> -> vector<8x16xf32>
    %cst_14 = arith.constant dense<0xFF800000> : vector<8xf32>
    %18 = vector.multi_reduction <maximumf>, %17, %cst_14 [1] : vector<8x16xf32> to vector<8xf32>
    %19 = vector.shape_cast %18 : vector<8xf32> to vector<8x1xf32>
    %20 = vector.broadcast %19 : vector<8x1xf32> to vector<8x16xf32>
    %21 = arith.subf %17, %20 : vector<8x16xf32>
    %22 = math.exp %21 : vector<8x16xf32>
    %cst_15 = arith.constant dense<0.000000e+00> : vector<8xf32>
    %23 = vector.multi_reduction <add>, %22, %cst_15 [1] : vector<8x16xf32> to vector<8xf32>
    %24 = vector.shape_cast %23 : vector<8xf32> to vector<8x1xf32>
    %25 = tpu.reciprocal %24 {approx = true} : vector<8x1xf32> -> vector<8x1xf32>
    %26 = vector.broadcast %25 : vector<8x1xf32> to vector<8x16xf32>
    %27 = arith.mulf %22, %26 : vector<8x16xf32>
    %28 = arith.truncf %27 : vector<8x16xf32> to vector<8x16xbf16>
    %cst_16 = arith.constant dense<0.000000e+00> : vector<8x8xf32>
    %29 = tpu.matmul %28, %14, %cst_16 {dimension_numbers = #tpu.dot_dimension_numbers<[1], [0], [0], [1], [0, 0, 1, 1], [], []>} : vector<8x16xbf16>, vector<16x8xbf16>, vector<8x8xf32> -> vector<8x8xf32>
    %c0_17 = arith.constant 0 : index
    %c0_18 = arith.constant 0 : index
    %30 = vector.load %arg22[%c0_17, %c0_18] : memref<16x32xf32, #tpu.memory_space<vmem>>, vector<8x8xf32>
    tpu.vector_store %arg22[%c0_17, %c0_18], %29 {strides = array<i32>} : memref<16x32xf32, #tpu.memory_space<vmem>>, vector<8x8xf32>,
    %31 = vector.extract_strided_slice %12 {offsets = [0, 8], sizes = [16, 8], strides = [1, 1]} : vector<16x32xf32> to vector<16x8xf32>
    %32 = arith.truncf %31 : vector<16x8xf32> to vector<16x8xbf16>
    %c1 = arith.constant 1 : index
    %c0_19 = arith.constant 0 : index
    %c0_20 = arith.constant 0 : index
    %33 = vector.load %arg4[%c1, %c0_19, %c0_20] : memref<4x8x8xbf16, #tpu.memory_space<vmem>>, vector<1x8x8xbf16>
    %34 = vector.shape_cast %33 : vector<1x8x8xbf16> to vector<8x8xbf16>
    %cst_21 = arith.constant dense<0.000000e+00> : vector<8x16xf32>
    %35 = tpu.matmul %34, %32, %cst_21 {dimension_numbers = #tpu.dot_dimension_numbers<[1], [1], [0], [0], [0, 0, 1, 0], [], []>} : vector<8x8xbf16>, vector<16x8xbf16>, vector<8x16xf32> -> vector<8x16xf32>
    %cst_22 = arith.constant dense<0xFF800000> : vector<8xf32>
    %36 = vector.multi_reduction <maximumf>, %35, %cst_22 [1] : vector<8x16xf32> to vector<8xf32>
    %37 = vector.shape_cast %36 : vector<8xf32> to vector<8x1xf32>
    %38 = vector.broadcast %37 : vector<8x1xf32> to vector<8x16xf32>
    %39 = arith.subf %35, %38 : vector<8x16xf32>
    %40 = math.exp %39 : vector<8x16xf32>
    %cst_23 = arith.constant dense<0.000000e+00> : vector<8xf32>
    %41 = vector.multi_reduction <add>, %40, %cst_23 [1] : vector<8x16xf32> to vector<8xf32>
    %42 = vector.shape_cast %41 : vector<8xf32> to vector<8x1xf32>
    %43 = tpu.reciprocal %42 {approx = true} : vector<8x1xf32> -> vector<8x1xf32>
    %44 = vector.broadcast %43 : vector<8x1xf32> to vector<8x16xf32>
    %45 = arith.mulf %40, %44 : vector<8x16xf32>
    %46 = arith.truncf %45 : vector<8x16xf32> to vector<8x16xbf16>
    %cst_24 = arith.constant dense<0.000000e+00> : vector<8x8xf32>
    %47 = tpu.matmul %46, %32, %cst_24 {dimension_numbers = #tpu.dot_dimension_numbers<[1], [0], [0], [1], [0, 0, 1, 1], [], []>} : vector<8x16xbf16>, vector<16x8xbf16>, vector<8x8xf32> -> vector<8x8xf32>
    %c0_25 = arith.constant 0 : index
    %c8 = arith.constant 8 : index
    %48 = vector.load %arg22[%c0_25, %c8] : memref<16x32xf32, #tpu.memory_space<vmem>>, vector<8x8xf32>
    tpu.vector_store %arg22[%c0_25, %c8], %47 {strides = array<i32>} : memref<16x32xf32, #tpu.memory_space<vmem>>, vector<8x8xf32>,
    %49 = vector.extract_strided_slice %12 {offsets = [0, 16], sizes = [16, 8], strides = [1, 1]} : vector<16x32xf32> to vector<16x8xf32>
    %50 = arith.truncf %49 : vector<16x8xf32> to vector<16x8xbf16>
    %c2 = arith.constant 2 : index
    %c0_26 = arith.constant 0 : index
    %c0_27 = arith.constant 0 : index
    %51 = vector.load %arg4[%c2, %c0_26, %c0_27] : memref<4x8x8xbf16, #tpu.memory_space<vmem>>, vector<1x8x8xbf16>
    %52 = vector.shape_cast %51 : vector<1x8x8xbf16> to vector<8x8xbf16>
    %cst_28 = arith.constant dense<0.000000e+00> : vector<8x16xf32>
    %53 = tpu.matmul %52, %50, %cst_28 {dimension_numbers = #tpu.dot_dimension_numbers<[1], [1], [0], [0], [0, 0, 1, 0], [], []>} : vector<8x8xbf16>, vector<16x8xbf16>, vector<8x16xf32> -> vector<8x16xf32>
    %cst_29 = arith.constant dense<0xFF800000> : vector<8xf32>
    %54 = vector.multi_reduction <maximumf>, %53, %cst_29 [1] : vector<8x16xf32> to vector<8xf32>
    %55 = vector.shape_cast %54 : vector<8xf32> to vector<8x1xf32>
    %56 = vector.broadcast %55 : vector<8x1xf32> to vector<8x16xf32>
    %57 = arith.subf %53, %56 : vector<8x16xf32>
    %58 = math.exp %57 : vector<8x16xf32>
    %cst_30 = arith.constant dense<0.000000e+00> : vector<8xf32>
    %59 = vector.multi_reduction <add>, %58, %cst_30 [1] : vector<8x16xf32> to vector<8xf32>
    %60 = vector.shape_cast %59 : vector<8xf32> to vector<8x1xf32>
    %61 = tpu.reciprocal %60 {approx = true} : vector<8x1xf32> -> vector<8x1xf32>
    %62 = vector.broadcast %61 : vector<8x1xf32> to vector<8x16xf32>
    %63 = arith.mulf %58, %62 : vector<8x16xf32>
    %64 = arith.truncf %63 : vector<8x16xf32> to vector<8x16xbf16>
    %cst_31 = arith.constant dense<0.000000e+00> : vector<8x8xf32>
    %65 = tpu.matmul %64, %50, %cst_31 {dimension_numbers = #tpu.dot_dimension_numbers<[1], [0], [0], [1], [0, 0, 1, 1], [], []>} : vector<8x16xbf16>, vector<16x8xbf16>, vector<8x8xf32> -> vector<8x8xf32>
    %c0_32 = arith.constant 0 : index
    %c16 = arith.constant 16 : index
    %66 = vector.load %arg22[%c0_32, %c16] : memref<16x32xf32, #tpu.memory_space<vmem>>, vector<8x8xf32>
    tpu.vector_store %arg22[%c0_32, %c16], %65 {strides = array<i32>} : memref<16x32xf32, #tpu.memory_space<vmem>>, vector<8x8xf32>,
    %67 = vector.extract_strided_slice %12 {offsets = [0, 24], sizes = [16, 8], strides = [1, 1]} : vector<16x32xf32> to vector<16x8xf32>
    %68 = arith.truncf %67 : vector<16x8xf32> to vector<16x8xbf16>
    %c3 = arith.constant 3 : index
    %c0_33 = arith.constant 0 : index
    %c0_34 = arith.constant 0 : index
    %69 = vector.load %arg4[%c3, %c0_33, %c0_34] : memref<4x8x8xbf16, #tpu.memory_space<vmem>>, vector<1x8x8xbf16>
    %70 = vector.shape_cast %69 : vector<1x8x8xbf16> to vector<8x8xbf16>
    %cst_35 = arith.constant dense<0.000000e+00> : vector<8x16xf32>
    %71 = tpu.matmul %70, %68, %cst_35 {dimension_numbers = #tpu.dot_dimension_numbers<[1], [1], [0], [0], [0, 0, 1, 0], [], []>} : vector<8x8xbf16>, vector<16x8xbf16>, vector<8x16xf32> -> vector<8x16xf32>
    %cst_36 = arith.constant dense<0xFF800000> : vector<8xf32>
    %72 = vector.multi_reduction <maximumf>, %71, %cst_36 [1] : vector<8x16xf32> to vector<8xf32>
    %73 = vector.shape_cast %72 : vector<8xf32> to vector<8x1xf32>
    %74 = vector.broadcast %73 : vector<8x1xf32> to vector<8x16xf32>
    %75 = arith.subf %71, %74 : vector<8x16xf32>
    %76 = math.exp %75 : vector<8x16xf32>
    %cst_37 = arith.constant dense<0.000000e+00> : vector<8xf32>
    %77 = vector.multi_reduction <add>, %76, %cst_37 [1] : vector<8x16xf32> to vector<8xf32>
    %78 = vector.shape_cast %77 : vector<8xf32> to vector<8x1xf32>
    %79 = tpu.reciprocal %78 {approx = true} : vector<8x1xf32> -> vector<8x1xf32>
    %80 = vector.broadcast %79 : vector<8x1xf32> to vector<8x16xf32>
    %81 = arith.mulf %76, %80 : vector<8x16xf32>
    %82 = arith.truncf %81 : vector<8x16xf32> to vector<8x16xbf16>
    %cst_38 = arith.constant dense<0.000000e+00> : vector<8x8xf32>
    %83 = tpu.matmul %82, %68, %cst_38 {dimension_numbers = #tpu.dot_dimension_numbers<[1], [0], [0], [1], [0, 0, 1, 1], [], []>} : vector<8x16xbf16>, vector<16x8xbf16>, vector<8x8xf32> -> vector<8x8xf32>
    %c0_39 = arith.constant 0 : index
    %c24 = arith.constant 24 : index
    %84 = vector.load %arg22[%c0_39, %c24] : memref<16x32xf32, #tpu.memory_space<vmem>>, vector<8x8xf32>
    tpu.vector_store %arg22[%c0_39, %c24], %83 {strides = array<i32>} : memref<16x32xf32, #tpu.memory_space<vmem>>, vector<8x8xf32>,
    %85 = vector.extract_strided_slice %6 {offsets = [16, 0], sizes = [16, 32], strides = [1, 1]} : vector<32x32xf32> to vector<16x32xf32>
    %86 = vector.extract_strided_slice %85 {offsets = [0, 0], sizes = [16, 8], strides = [1, 1]} : vector<16x32xf32> to vector<16x8xf32>
    %87 = arith.truncf %86 : vector<16x8xf32> to vector<16x8xbf16>
    %c0_40 = arith.constant 0 : index
    %c0_41 = arith.constant 0 : index
    %c0_42 = arith.constant 0 : index
    %88 = vector.load %arg4[%c0_40, %c0_41, %c0_42] : memref<4x8x8xbf16, #tpu.memory_space<vmem>>, vector<1x8x8xbf16>
    %89 = vector.shape_cast %88 : vector<1x8x8xbf16> to vector<8x8xbf16>
    %cst_43 = arith.constant dense<0.000000e+00> : vector<8x16xf32>
    %90 = tpu.matmul %89, %87, %cst_43 {dimension_numbers = #tpu.dot_dimension_numbers<[1], [1], [0], [0], [0, 0, 1, 0], [], []>} : vector<8x8xbf16>, vector<16x8xbf16>, vector<8x16xf32> -> vector<8x16xf32>
    %cst_44 = arith.constant dense<0xFF800000> : vector<8xf32>
    %91 = vector.multi_reduction <maximumf>, %90, %cst_44 [1] : vector<8x16xf32> to vector<8xf32>
    %92 = vector.shape_cast %91 : vector<8xf32> to vector<8x1xf32>
    %93 = vector.broadcast %92 : vector<8x1xf32> to vector<8x16xf32>
    %94 = arith.subf %90, %93 : vector<8x16xf32>
    %95 = math.exp %94 : vector<8x16xf32>
    %cst_45 = arith.constant dense<0.000000e+00> : vector<8xf32>
    %96 = vector.multi_reduction <add>, %95, %cst_45 [1] : vector<8x16xf32> to vector<8xf32>
    %97 = vector.shape_cast %96 : vector<8xf32> to vector<8x1xf32>
    %98 = tpu.reciprocal %97 {approx = true} : vector<8x1xf32> -> vector<8x1xf32>
    %99 = vector.broadcast %98 : vector<8x1xf32> to vector<8x16xf32>
    %100 = arith.mulf %95, %99 : vector<8x16xf32>
    %101 = arith.truncf %100 : vector<8x16xf32> to vector<8x16xbf16>
    %cst_46 = arith.constant dense<0.000000e+00> : vector<8x8xf32>
    %102 = tpu.matmul %101, %87, %cst_46 {dimension_numbers = #tpu.dot_dimension_numbers<[1], [0], [0], [1], [0, 0, 1, 1], [], []>} : vector<8x16xbf16>, vector<16x8xbf16>, vector<8x8xf32> -> vector<8x8xf32>
    %c8_47 = arith.constant 8 : index
    %c0_48 = arith.constant 0 : index
    %103 = vector.load %arg22[%c8_47, %c0_48] : memref<16x32xf32, #tpu.memory_space<vmem>>, vector<8x8xf32>
    tpu.vector_store %arg22[%c8_47, %c0_48], %102 {strides = array<i32>} : memref<16x32xf32, #tpu.memory_space<vmem>>, vector<8x8xf32>,
    %104 = vector.extract_strided_slice %85 {offsets = [0, 8], sizes = [16, 8], strides = [1, 1]} : vector<16x32xf32> to vector<16x8xf32>
    %105 = arith.truncf %104 : vector<16x8xf32> to vector<16x8xbf16>
    %c1_49 = arith.constant 1 : index
    %c0_50 = arith.constant 0 : index
    %c0_51 = arith.constant 0 : index
    %106 = vector.load %arg4[%c1_49, %c0_50, %c0_51] : memref<4x8x8xbf16, #tpu.memory_space<vmem>>, vector<1x8x8xbf16>
    %107 = vector.shape_cast %106 : vector<1x8x8xbf16> to vector<8x8xbf16>
    %cst_52 = arith.constant dense<0.000000e+00> : vector<8x16xf32>
    %108 = tpu.matmul %107, %105, %cst_52 {dimension_numbers = #tpu.dot_dimension_numbers<[1], [1], [0], [0], [0, 0, 1, 0], [], []>} : vector<8x8xbf16>, vector<16x8xbf16>, vector<8x16xf32> -> vector<8x16xf32>
    %cst_53 = arith.constant dense<0xFF800000> : vector<8xf32>
    %109 = vector.multi_reduction <maximumf>, %108, %cst_53 [1] : vector<8x16xf32> to vector<8xf32>
    %110 = vector.shape_cast %109 : vector<8xf32> to vector<8x1xf32>
    %111 = vector.broadcast %110 : vector<8x1xf32> to vector<8x16xf32>
    %112 = arith.subf %108, %111 : vector<8x16xf32>
    %113 = math.exp %112 : vector<8x16xf32>
    %cst_54 = arith.constant dense<0.000000e+00> : vector<8xf32>
    %114 = vector.multi_reduction <add>, %113, %cst_54 [1] : vector<8x16xf32> to vector<8xf32>
    %115 = vector.shape_cast %114 : vector<8xf32> to vector<8x1xf32>
    %116 = tpu.reciprocal %115 {approx = true} : vector<8x1xf32> -> vector<8x1xf32>
    %117 = vector.broadcast %116 : vector<8x1xf32> to vector<8x16xf32>
    %118 = arith.mulf %113, %117 : vector<8x16xf32>
    %119 = arith.truncf %118 : vector<8x16xf32> to vector<8x16xbf16>
    %cst_55 = arith.constant dense<0.000000e+00> : vector<8x8xf32>
    %120 = tpu.matmul %119, %105, %cst_55 {dimension_numbers = #tpu.dot_dimension_numbers<[1], [0], [0], [1], [0, 0, 1, 1], [], []>} : vector<8x16xbf16>, vector<16x8xbf16>, vector<8x8xf32> -> vector<8x8xf32>
    %c8_56 = arith.constant 8 : index
    %c8_57 = arith.constant 8 : index
    %121 = vector.load %arg22[%c8_56, %c8_57] : memref<16x32xf32, #tpu.memory_space<vmem>>, vector<8x8xf32>
    tpu.vector_store %arg22[%c8_56, %c8_57], %120 {strides = array<i32>} : memref<16x32xf32, #tpu.memory_space<vmem>>, vector<8x8xf32>,
    %122 = vector.extract_strided_slice %85 {offsets = [0, 16], sizes = [16, 8], strides = [1, 1]} : vector<16x32xf32> to vector<16x8xf32>
    %123 = arith.truncf %122 : vector<16x8xf32> to vector<16x8xbf16>
    %c2_58 = arith.constant 2 : index
    %c0_59 = arith.constant 0 : index
    %c0_60 = arith.constant 0 : index
    %124 = vector.load %arg4[%c2_58, %c0_59, %c0_60] : memref<4x8x8xbf16, #tpu.memory_space<vmem>>, vector<1x8x8xbf16>
    %125 = vector.shape_cast %124 : vector<1x8x8xbf16> to vector<8x8xbf16>
    %cst_61 = arith.constant dense<0.000000e+00> : vector<8x16xf32>
    %126 = tpu.matmul %125, %123, %cst_61 {dimension_numbers = #tpu.dot_dimension_numbers<[1], [1], [0], [0], [0, 0, 1, 0], [], []>} : vector<8x8xbf16>, vector<16x8xbf16>, vector<8x16xf32> -> vector<8x16xf32>
    %cst_62 = arith.constant dense<0xFF800000> : vector<8xf32>
    %127 = vector.multi_reduction <maximumf>, %126, %cst_62 [1] : vector<8x16xf32> to vector<8xf32>
    %128 = vector.shape_cast %127 : vector<8xf32> to vector<8x1xf32>
    %129 = vector.broadcast %128 : vector<8x1xf32> to vector<8x16xf32>
    %130 = arith.subf %126, %129 : vector<8x16xf32>
    %131 = math.exp %130 : vector<8x16xf32>
    %cst_63 = arith.constant dense<0.000000e+00> : vector<8xf32>
    %132 = vector.multi_reduction <add>, %131, %cst_63 [1] : vector<8x16xf32> to vector<8xf32>
    %133 = vector.shape_cast %132 : vector<8xf32> to vector<8x1xf32>
    %134 = tpu.reciprocal %133 {approx = true} : vector<8x1xf32> -> vector<8x1xf32>
    %135 = vector.broadcast %134 : vector<8x1xf32> to vector<8x16xf32>
    %136 = arith.mulf %131, %135 : vector<8x16xf32>
    %137 = arith.truncf %136 : vector<8x16xf32> to vector<8x16xbf16>
    %cst_64 = arith.constant dense<0.000000e+00> : vector<8x8xf32>
    %138 = tpu.matmul %137, %123, %cst_64 {dimension_numbers = #tpu.dot_dimension_numbers<[1], [0], [0], [1], [0, 0, 1, 1], [], []>} : vector<8x16xbf16>, vector<16x8xbf16>, vector<8x8xf32> -> vector<8x8xf32>
    %c8_65 = arith.constant 8 : index
    %c16_66 = arith.constant 16 : index
    %139 = vector.load %arg22[%c8_65, %c16_66] : memref<16x32xf32, #tpu.memory_space<vmem>>, vector<8x8xf32>
    tpu.vector_store %arg22[%c8_65, %c16_66], %138 {strides = array<i32>} : memref<16x32xf32, #tpu.memory_space<vmem>>, vector<8x8xf32>,
    %140 = vector.extract_strided_slice %85 {offsets = [0, 24], sizes = [16, 8], strides = [1, 1]} : vector<16x32xf32> to vector<16x8xf32>
    %141 = arith.truncf %140 : vector<16x8xf32> to vector<16x8xbf16>
    %c3_67 = arith.constant 3 : index
    %c0_68 = arith.constant 0 : index
    %c0_69 = arith.constant 0 : index
    %142 = vector.load %arg4[%c3_67, %c0_68, %c0_69] : memref<4x8x8xbf16, #tpu.memory_space<vmem>>, vector<1x8x8xbf16>
    %143 = vector.shape_cast %142 : vector<1x8x8xbf16> to vector<8x8xbf16>
    %cst_70 = arith.constant dense<0.000000e+00> : vector<8x16xf32>
    %144 = tpu.matmul %143, %141, %cst_70 {dimension_numbers = #tpu.dot_dimension_numbers<[1], [1], [0], [0], [0, 0, 1, 0], [], []>} : vector<8x8xbf16>, vector<16x8xbf16>, vector<8x16xf32> -> vector<8x16xf32>
    %cst_71 = arith.constant dense<0xFF800000> : vector<8xf32>
    %145 = vector.multi_reduction <maximumf>, %144, %cst_71 [1] : vector<8x16xf32> to vector<8xf32>
    %146 = vector.shape_cast %145 : vector<8xf32> to vector<8x1xf32>
    %147 = vector.broadcast %146 : vector<8x1xf32> to vector<8x16xf32>
    %148 = arith.subf %144, %147 : vector<8x16xf32>
    %149 = math.exp %148 : vector<8x16xf32>
    %cst_72 = arith.constant dense<0.000000e+00> : vector<8xf32>
    %150 = vector.multi_reduction <add>, %149, %cst_72 [1] : vector<8x16xf32> to vector<8xf32>
    %151 = vector.shape_cast %150 : vector<8xf32> to vector<8x1xf32>
    %152 = tpu.reciprocal %151 {approx = true} : vector<8x1xf32> -> vector<8x1xf32>
    %153 = vector.broadcast %152 : vector<8x1xf32> to vector<8x16xf32>
    %154 = arith.mulf %149, %153 : vector<8x16xf32>
    %155 = arith.truncf %154 : vector<8x16xf32> to vector<8x16xbf16>
    %cst_73 = arith.constant dense<0.000000e+00> : vector<8x8xf32>
    %156 = tpu.matmul %155, %141, %cst_73 {dimension_numbers = #tpu.dot_dimension_numbers<[1], [0], [0], [1], [0, 0, 1, 1], [], []>} : vector<8x16xbf16>, vector<16x8xbf16>, vector<8x8xf32> -> vector<8x8xf32>
    %c8_74 = arith.constant 8 : index
    %c24_75 = arith.constant 24 : index
    %157 = vector.load %arg22[%c8_74, %c24_75] : memref<16x32xf32, #tpu.memory_space<vmem>>, vector<8x8xf32>
    tpu.vector_store %arg22[%c8_74, %c24_75], %156 {strides = array<i32>} : memref<16x32xf32, #tpu.memory_space<vmem>>, vector<8x8xf32>,
    %c0_76 = arith.constant 0 : index
    %c0_77 = arith.constant 0 : index
    %158 = vector.load %arg22[%c0_76, %c0_77] : memref<16x32xf32, #tpu.memory_space<vmem>>, vector<16x32xf32>
    %159 = arith.truncf %158 : vector<16x32xf32> to vector<16x32xbf16>
    %c0_78 = arith.constant 0 : index
    %c0_79 = arith.constant 0 : index
    %160 = vector.load %arg7[%c0_78, %c0_79] : memref<32x32xbf16, #tpu.memory_space<vmem>>, vector<32x32xbf16>
    %cst_80 = arith.constant dense<0.000000e+00> : vector<16x32xf32>
    %161 = tpu.matmul %159, %160, %cst_80 {dimension_numbers = #tpu.dot_dimension_numbers<[1], [0], [0], [1], [0, 0, 1, 1], [], []>} : vector<16x32xbf16>, vector<32x32xbf16>, vector<16x32xf32> -> vector<16x32xf32>
    %c0_81 = arith.constant 0 : index
    %c0_82 = arith.constant 0 : index
    %162 = vector.load %arg8[%c0_81, %c0_82] : memref<1x32xf32, #tpu.memory_space<vmem>>, vector<1x32xf32>
    %163 = vector.broadcast %162 : vector<1x32xf32> to vector<16x32xf32>
    %164 = arith.addf %161, %163 : vector<16x32xf32>
    %c0_83 = arith.constant 0 : index
    %c0_84 = arith.constant 0 : index
    %165 = vector.load %arg9[%c0_83, %c0_84] : memref<32x32xbf16, #tpu.memory_space<vmem>>, vector<32x32xbf16>
    %cst_85 = arith.constant dense<0.000000e+00> : vector<16x32xf32>
    %166 = tpu.matmul %159, %165, %cst_85 {dimension_numbers = #tpu.dot_dimension_numbers<[1], [0], [0], [1], [0, 0, 1, 1], [], []>} : vector<16x32xbf16>, vector<32x32xbf16>, vector<16x32xf32> -> vector<16x32xf32>
    %c0_86 = arith.constant 0 : index
    %c0_87 = arith.constant 0 : index
    %167 = vector.load %arg10[%c0_86, %c0_87] : memref<1x32xf32, #tpu.memory_space<vmem>>, vector<1x32xf32>
    %168 = vector.broadcast %167 : vector<1x32xf32> to vector<16x32xf32>
    %169 = arith.addf %166, %168 : vector<16x32xf32>
    %170 = vector.extract_strided_slice %11 {offsets = [0, 0], sizes = [16, 32], strides = [1, 1]} : vector<32x32xf32> to vector<16x32xf32>
    %171 = vector.extract_strided_slice %164 {offsets = [0, 0], sizes = [8, 32], strides = [1, 1]} : vector<16x32xf32> to vector<8x32xf32>
    %172 = vector.extract_strided_slice %169 {offsets = [0, 0], sizes = [8, 32], strides = [1, 1]} : vector<16x32xf32> to vector<8x32xf32>
    %173 = vector.extract_strided_slice %170 {offsets = [0, 0], sizes = [16, 8], strides = [1, 1]} : vector<16x32xf32> to vector<16x8xf32>
    %174 = arith.truncf %173 : vector<16x8xf32> to vector<16x8xbf16>
    %175 = vector.extract_strided_slice %171 {offsets = [0, 0], sizes = [8, 8], strides = [1, 1]} : vector<8x32xf32> to vector<8x8xf32>
    %176 = arith.truncf %175 : vector<8x8xf32> to vector<8x8xbf16>
    %177 = vector.extract_strided_slice %172 {offsets = [0, 0], sizes = [8, 8], strides = [1, 1]} : vector<8x32xf32> to vector<8x8xf32>
    %178 = arith.truncf %177 : vector<8x8xf32> to vector<8x8xbf16>
    %cst_88 = arith.constant dense<0.000000e+00> : vector<16x8xf32>
    %179 = tpu.matmul %174, %176, %cst_88 {dimension_numbers = #tpu.dot_dimension_numbers<[1], [1], [0], [0], [0, 0, 1, 0], [], []>} : vector<16x8xbf16>, vector<8x8xbf16>, vector<16x8xf32> -> vector<16x8xf32>
    %cst_89 = arith.constant dense<0xFF800000> : vector<16xf32>
    %180 = vector.multi_reduction <maximumf>, %179, %cst_89 [1] : vector<16x8xf32> to vector<16xf32>
    %181 = vector.shape_cast %180 : vector<16xf32> to vector<16x1xf32>
    %182 = vector.broadcast %181 : vector<16x1xf32> to vector<16x8xf32>
    %183 = arith.subf %179, %182 : vector<16x8xf32>
    %184 = math.exp %183 : vector<16x8xf32>
    %cst_90 = arith.constant dense<0.000000e+00> : vector<16xf32>
    %185 = vector.multi_reduction <add>, %184, %cst_90 [1] : vector<16x8xf32> to vector<16xf32>
    %186 = vector.shape_cast %185 : vector<16xf32> to vector<16x1xf32>
    %187 = tpu.reciprocal %186 {approx = true} : vector<16x1xf32> -> vector<16x1xf32>
    %188 = vector.broadcast %187 : vector<16x1xf32> to vector<16x8xf32>
    %189 = arith.mulf %184, %188 : vector<16x8xf32>
    %190 = arith.truncf %189 : vector<16x8xf32> to vector<16x8xbf16>
    %cst_91 = arith.constant dense<0.000000e+00> : vector<16x8xf32>
    %191 = tpu.matmul %190, %178, %cst_91 {dimension_numbers = #tpu.dot_dimension_numbers<[1], [0], [0], [1], [0, 0, 1, 1], [], []>} : vector<16x8xbf16>, vector<8x8xbf16>, vector<16x8xf32> -> vector<16x8xf32>
    %c0_92 = arith.constant 0 : index
    %c0_93 = arith.constant 0 : index
    %192 = vector.load %arg23[%c0_92, %c0_93] : memref<32x32xf32, #tpu.memory_space<vmem>>, vector<16x8xf32>
    tpu.vector_store %arg23[%c0_92, %c0_93], %191 {strides = array<i32>} : memref<32x32xf32, #tpu.memory_space<vmem>>, vector<16x8xf32>,
    %193 = vector.extract_strided_slice %170 {offsets = [0, 8], sizes = [16, 8], strides = [1, 1]} : vector<16x32xf32> to vector<16x8xf32>
    %194 = arith.truncf %193 : vector<16x8xf32> to vector<16x8xbf16>
    %195 = vector.extract_strided_slice %171 {offsets = [0, 8], sizes = [8, 8], strides = [1, 1]} : vector<8x32xf32> to vector<8x8xf32>
    %196 = arith.truncf %195 : vector<8x8xf32> to vector<8x8xbf16>
    %197 = vector.extract_strided_slice %172 {offsets = [0, 8], sizes = [8, 8], strides = [1, 1]} : vector<8x32xf32> to vector<8x8xf32>
    %198 = arith.truncf %197 : vector<8x8xf32> to vector<8x8xbf16>
    %cst_94 = arith.constant dense<0.000000e+00> : vector<16x8xf32>
    %199 = tpu.matmul %194, %196, %cst_94 {dimension_numbers = #tpu.dot_dimension_numbers<[1], [1], [0], [0], [0, 0, 1, 0], [], []>} : vector<16x8xbf16>, vector<8x8xbf16>, vector<16x8xf32> -> vector<16x8xf32>
    %cst_95 = arith.constant dense<0xFF800000> : vector<16xf32>
    %200 = vector.multi_reduction <maximumf>, %199, %cst_95 [1] : vector<16x8xf32> to vector<16xf32>
    %201 = vector.shape_cast %200 : vector<16xf32> to vector<16x1xf32>
    %202 = vector.broadcast %201 : vector<16x1xf32> to vector<16x8xf32>
    %203 = arith.subf %199, %202 : vector<16x8xf32>
    %204 = math.exp %203 : vector<16x8xf32>
    %cst_96 = arith.constant dense<0.000000e+00> : vector<16xf32>
    %205 = vector.multi_reduction <add>, %204, %cst_96 [1] : vector<16x8xf32> to vector<16xf32>
    %206 = vector.shape_cast %205 : vector<16xf32> to vector<16x1xf32>
    %207 = tpu.reciprocal %206 {approx = true} : vector<16x1xf32> -> vector<16x1xf32>
    %208 = vector.broadcast %207 : vector<16x1xf32> to vector<16x8xf32>
    %209 = arith.mulf %204, %208 : vector<16x8xf32>
    %210 = arith.truncf %209 : vector<16x8xf32> to vector<16x8xbf16>
    %cst_97 = arith.constant dense<0.000000e+00> : vector<16x8xf32>
    %211 = tpu.matmul %210, %198, %cst_97 {dimension_numbers = #tpu.dot_dimension_numbers<[1], [0], [0], [1], [0, 0, 1, 1], [], []>} : vector<16x8xbf16>, vector<8x8xbf16>, vector<16x8xf32> -> vector<16x8xf32>
    %c0_98 = arith.constant 0 : index
    %c8_99 = arith.constant 8 : index
    %212 = vector.load %arg23[%c0_98, %c8_99] : memref<32x32xf32, #tpu.memory_space<vmem>>, vector<16x8xf32>
    tpu.vector_store %arg23[%c0_98, %c8_99], %211 {strides = array<i32>} : memref<32x32xf32, #tpu.memory_space<vmem>>, vector<16x8xf32>,
    %213 = vector.extract_strided_slice %170 {offsets = [0, 16], sizes = [16, 8], strides = [1, 1]} : vector<16x32xf32> to vector<16x8xf32>
    %214 = arith.truncf %213 : vector<16x8xf32> to vector<16x8xbf16>
    %215 = vector.extract_strided_slice %171 {offsets = [0, 16], sizes = [8, 8], strides = [1, 1]} : vector<8x32xf32> to vector<8x8xf32>
    %216 = arith.truncf %215 : vector<8x8xf32> to vector<8x8xbf16>
    %217 = vector.extract_strided_slice %172 {offsets = [0, 16], sizes = [8, 8], strides = [1, 1]} : vector<8x32xf32> to vector<8x8xf32>
    %218 = arith.truncf %217 : vector<8x8xf32> to vector<8x8xbf16>
    %cst_100 = arith.constant dense<0.000000e+00> : vector<16x8xf32>
    %219 = tpu.matmul %214, %216, %cst_100 {dimension_numbers = #tpu.dot_dimension_numbers<[1], [1], [0], [0], [0, 0, 1, 0], [], []>} : vector<16x8xbf16>, vector<8x8xbf16>, vector<16x8xf32> -> vector<16x8xf32>
    %cst_101 = arith.constant dense<0xFF800000> : vector<16xf32>
    %220 = vector.multi_reduction <maximumf>, %219, %cst_101 [1] : vector<16x8xf32> to vector<16xf32>
    %221 = vector.shape_cast %220 : vector<16xf32> to vector<16x1xf32>
    %222 = vector.broadcast %221 : vector<16x1xf32> to vector<16x8xf32>
    %223 = arith.subf %219, %222 : vector<16x8xf32>
    %224 = math.exp %223 : vector<16x8xf32>
    %cst_102 = arith.constant dense<0.000000e+00> : vector<16xf32>
    %225 = vector.multi_reduction <add>, %224, %cst_102 [1] : vector<16x8xf32> to vector<16xf32>
    %226 = vector.shape_cast %225 : vector<16xf32> to vector<16x1xf32>
    %227 = tpu.reciprocal %226 {approx = true} : vector<16x1xf32> -> vector<16x1xf32>
    %228 = vector.broadcast %227 : vector<16x1xf32> to vector<16x8xf32>
    %229 = arith.mulf %224, %228 : vector<16x8xf32>
    %230 = arith.truncf %229 : vector<16x8xf32> to vector<16x8xbf16>
    %cst_103 = arith.constant dense<0.000000e+00> : vector<16x8xf32>
    %231 = tpu.matmul %230, %218, %cst_103 {dimension_numbers = #tpu.dot_dimension_numbers<[1], [0], [0], [1], [0, 0, 1, 1], [], []>} : vector<16x8xbf16>, vector<8x8xbf16>, vector<16x8xf32> -> vector<16x8xf32>
    %c0_104 = arith.constant 0 : index
    %c16_105 = arith.constant 16 : index
    %232 = vector.load %arg23[%c0_104, %c16_105] : memref<32x32xf32, #tpu.memory_space<vmem>>, vector<16x8xf32>
    tpu.vector_store %arg23[%c0_104, %c16_105], %231 {strides = array<i32>} : memref<32x32xf32, #tpu.memory_space<vmem>>, vector<16x8xf32>,
    %233 = vector.extract_strided_slice %170 {offsets = [0, 24], sizes = [16, 8], strides = [1, 1]} : vector<16x32xf32> to vector<16x8xf32>
    %234 = arith.truncf %233 : vector<16x8xf32> to vector<16x8xbf16>
    %235 = vector.extract_strided_slice %171 {offsets = [0, 24], sizes = [8, 8], strides = [1, 1]} : vector<8x32xf32> to vector<8x8xf32>
    %236 = arith.truncf %235 : vector<8x8xf32> to vector<8x8xbf16>
    %237 = vector.extract_strided_slice %172 {offsets = [0, 24], sizes = [8, 8], strides = [1, 1]} : vector<8x32xf32> to vector<8x8xf32>
    %238 = arith.truncf %237 : vector<8x8xf32> to vector<8x8xbf16>
    %cst_106 = arith.constant dense<0.000000e+00> : vector<16x8xf32>
    %239 = tpu.matmul %234, %236, %cst_106 {dimension_numbers = #tpu.dot_dimension_numbers<[1], [1], [0], [0], [0, 0, 1, 0], [], []>} : vector<16x8xbf16>, vector<8x8xbf16>, vector<16x8xf32> -> vector<16x8xf32>
    %cst_107 = arith.constant dense<0xFF800000> : vector<16xf32>
    %240 = vector.multi_reduction <maximumf>, %239, %cst_107 [1] : vector<16x8xf32> to vector<16xf32>
    %241 = vector.shape_cast %240 : vector<16xf32> to vector<16x1xf32>
    %242 = vector.broadcast %241 : vector<16x1xf32> to vector<16x8xf32>
    %243 = arith.subf %239, %242 : vector<16x8xf32>
    %244 = math.exp %243 : vector<16x8xf32>
    %cst_108 = arith.constant dense<0.000000e+00> : vector<16xf32>
    %245 = vector.multi_reduction <add>, %244, %cst_108 [1] : vector<16x8xf32> to vector<16xf32>
    %246 = vector.shape_cast %245 : vector<16xf32> to vector<16x1xf32>
    %247 = tpu.reciprocal %246 {approx = true} : vector<16x1xf32> -> vector<16x1xf32>
    %248 = vector.broadcast %247 : vector<16x1xf32> to vector<16x8xf32>
    %249 = arith.mulf %244, %248 : vector<16x8xf32>
    %250 = arith.truncf %249 : vector<16x8xf32> to vector<16x8xbf16>
    %cst_109 = arith.constant dense<0.000000e+00> : vector<16x8xf32>
    %251 = tpu.matmul %250, %238, %cst_109 {dimension_numbers = #tpu.dot_dimension_numbers<[1], [0], [0], [1], [0, 0, 1, 1], [], []>} : vector<16x8xbf16>, vector<8x8xbf16>, vector<16x8xf32> -> vector<16x8xf32>
    %c0_110 = arith.constant 0 : index
    %c24_111 = arith.constant 24 : index
    %252 = vector.load %arg23[%c0_110, %c24_111] : memref<32x32xf32, #tpu.memory_space<vmem>>, vector<16x8xf32>
    tpu.vector_store %arg23[%c0_110, %c24_111], %251 {strides = array<i32>} : memref<32x32xf32, #tpu.memory_space<vmem>>, vector<16x8xf32>,
    %253 = vector.extract_strided_slice %11 {offsets = [16, 0], sizes = [16, 32], strides = [1, 1]} : vector<32x32xf32> to vector<16x32xf32>
    %254 = vector.extract_strided_slice %164 {offsets = [8, 0], sizes = [8, 32], strides = [1, 1]} : vector<16x32xf32> to vector<8x32xf32>
    %255 = vector.extract_strided_slice %169 {offsets = [8, 0], sizes = [8, 32], strides = [1, 1]} : vector<16x32xf32> to vector<8x32xf32>
    %256 = vector.extract_strided_slice %253 {offsets = [0, 0], sizes = [16, 8], strides = [1, 1]} : vector<16x32xf32> to vector<16x8xf32>
    %257 = arith.truncf %256 : vector<16x8xf32> to vector<16x8xbf16>
    %258 = vector.extract_strided_slice %254 {offsets = [0, 0], sizes = [8, 8], strides = [1, 1]} : vector<8x32xf32> to vector<8x8xf32>
    %259 = arith.truncf %258 : vector<8x8xf32> to vector<8x8xbf16>
    %260 = vector.extract_strided_slice %255 {offsets = [0, 0], sizes = [8, 8], strides = [1, 1]} : vector<8x32xf32> to vector<8x8xf32>
    %261 = arith.truncf %260 : vector<8x8xf32> to vector<8x8xbf16>
    %cst_112 = arith.constant dense<0.000000e+00> : vector<16x8xf32>
    %262 = tpu.matmul %257, %259, %cst_112 {dimension_numbers = #tpu.dot_dimension_numbers<[1], [1], [0], [0], [0, 0, 1, 0], [], []>} : vector<16x8xbf16>, vector<8x8xbf16>, vector<16x8xf32> -> vector<16x8xf32>
    %cst_113 = arith.constant dense<0xFF800000> : vector<16xf32>
    %263 = vector.multi_reduction <maximumf>, %262, %cst_113 [1] : vector<16x8xf32> to vector<16xf32>
    %264 = vector.shape_cast %263 : vector<16xf32> to vector<16x1xf32>
    %265 = vector.broadcast %264 : vector<16x1xf32> to vector<16x8xf32>
    %266 = arith.subf %262, %265 : vector<16x8xf32>
    %267 = math.exp %266 : vector<16x8xf32>
    %cst_114 = arith.constant dense<0.000000e+00> : vector<16xf32>
    %268 = vector.multi_reduction <add>, %267, %cst_114 [1] : vector<16x8xf32> to vector<16xf32>
    %269 = vector.shape_cast %268 : vector<16xf32> to vector<16x1xf32>
    %270 = tpu.reciprocal %269 {approx = true} : vector<16x1xf32> -> vector<16x1xf32>
    %271 = vector.broadcast %270 : vector<16x1xf32> to vector<16x8xf32>
    %272 = arith.mulf %267, %271 : vector<16x8xf32>
    %273 = arith.truncf %272 : vector<16x8xf32> to vector<16x8xbf16>
    %cst_115 = arith.constant dense<0.000000e+00> : vector<16x8xf32>
    %274 = tpu.matmul %273, %261, %cst_115 {dimension_numbers = #tpu.dot_dimension_numbers<[1], [0], [0], [1], [0, 0, 1, 1], [], []>} : vector<16x8xbf16>, vector<8x8xbf16>, vector<16x8xf32> -> vector<16x8xf32>
    %c16_116 = arith.constant 16 : index
    %c0_117 = arith.constant 0 : index
    %275 = vector.load %arg23[%c16_116, %c0_117] : memref<32x32xf32, #tpu.memory_space<vmem>>, vector<16x8xf32>
    tpu.vector_store %arg23[%c16_116, %c0_117], %274 {strides = array<i32>} : memref<32x32xf32, #tpu.memory_space<vmem>>, vector<16x8xf32>,
    %276 = vector.extract_strided_slice %253 {offsets = [0, 8], sizes = [16, 8], strides = [1, 1]} : vector<16x32xf32> to vector<16x8xf32>
    %277 = arith.truncf %276 : vector<16x8xf32> to vector<16x8xbf16>
    %278 = vector.extract_strided_slice %254 {offsets = [0, 8], sizes = [8, 8], strides = [1, 1]} : vector<8x32xf32> to vector<8x8xf32>
    %279 = arith.truncf %278 : vector<8x8xf32> to vector<8x8xbf16>
    %280 = vector.extract_strided_slice %255 {offsets = [0, 8], sizes = [8, 8], strides = [1, 1]} : vector<8x32xf32> to vector<8x8xf32>
    %281 = arith.truncf %280 : vector<8x8xf32> to vector<8x8xbf16>
    %cst_118 = arith.constant dense<0.000000e+00> : vector<16x8xf32>
    %282 = tpu.matmul %277, %279, %cst_118 {dimension_numbers = #tpu.dot_dimension_numbers<[1], [1], [0], [0], [0, 0, 1, 0], [], []>} : vector<16x8xbf16>, vector<8x8xbf16>, vector<16x8xf32> -> vector<16x8xf32>
    %cst_119 = arith.constant dense<0xFF800000> : vector<16xf32>
    %283 = vector.multi_reduction <maximumf>, %282, %cst_119 [1] : vector<16x8xf32> to vector<16xf32>
    %284 = vector.shape_cast %283 : vector<16xf32> to vector<16x1xf32>
    %285 = vector.broadcast %284 : vector<16x1xf32> to vector<16x8xf32>
    %286 = arith.subf %282, %285 : vector<16x8xf32>
    %287 = math.exp %286 : vector<16x8xf32>
    %cst_120 = arith.constant dense<0.000000e+00> : vector<16xf32>
    %288 = vector.multi_reduction <add>, %287, %cst_120 [1] : vector<16x8xf32> to vector<16xf32>
    %289 = vector.shape_cast %288 : vector<16xf32> to vector<16x1xf32>
    %290 = tpu.reciprocal %289 {approx = true} : vector<16x1xf32> -> vector<16x1xf32>
    %291 = vector.broadcast %290 : vector<16x1xf32> to vector<16x8xf32>
    %292 = arith.mulf %287, %291 : vector<16x8xf32>
    %293 = arith.truncf %292 : vector<16x8xf32> to vector<16x8xbf16>
    %cst_121 = arith.constant dense<0.000000e+00> : vector<16x8xf32>
    %294 = tpu.matmul %293, %281, %cst_121 {dimension_numbers = #tpu.dot_dimension_numbers<[1], [0], [0], [1], [0, 0, 1, 1], [], []>} : vector<16x8xbf16>, vector<8x8xbf16>, vector<16x8xf32> -> vector<16x8xf32>
    %c16_122 = arith.constant 16 : index
    %c8_123 = arith.constant 8 : index
    %295 = vector.load %arg23[%c16_122, %c8_123] : memref<32x32xf32, #tpu.memory_space<vmem>>, vector<16x8xf32>
    tpu.vector_store %arg23[%c16_122, %c8_123], %294 {strides = array<i32>} : memref<32x32xf32, #tpu.memory_space<vmem>>, vector<16x8xf32>,
    %296 = vector.extract_strided_slice %253 {offsets = [0, 16], sizes = [16, 8], strides = [1, 1]} : vector<16x32xf32> to vector<16x8xf32>
    %297 = arith.truncf %296 : vector<16x8xf32> to vector<16x8xbf16>
    %298 = vector.extract_strided_slice %254 {offsets = [0, 16], sizes = [8, 8], strides = [1, 1]} : vector<8x32xf32> to vector<8x8xf32>
    %299 = arith.truncf %298 : vector<8x8xf32> to vector<8x8xbf16>
    %300 = vector.extract_strided_slice %255 {offsets = [0, 16], sizes = [8, 8], strides = [1, 1]} : vector<8x32xf32> to vector<8x8xf32>
    %301 = arith.truncf %300 : vector<8x8xf32> to vector<8x8xbf16>
    %cst_124 = arith.constant dense<0.000000e+00> : vector<16x8xf32>
    %302 = tpu.matmul %297, %299, %cst_124 {dimension_numbers = #tpu.dot_dimension_numbers<[1], [1], [0], [0], [0, 0, 1, 0], [], []>} : vector<16x8xbf16>, vector<8x8xbf16>, vector<16x8xf32> -> vector<16x8xf32>
    %cst_125 = arith.constant dense<0xFF800000> : vector<16xf32>
    %303 = vector.multi_reduction <maximumf>, %302, %cst_125 [1] : vector<16x8xf32> to vector<16xf32>
    %304 = vector.shape_cast %303 : vector<16xf32> to vector<16x1xf32>
    %305 = vector.broadcast %304 : vector<16x1xf32> to vector<16x8xf32>
    %306 = arith.subf %302, %305 : vector<16x8xf32>
    %307 = math.exp %306 : vector<16x8xf32>
    %cst_126 = arith.constant dense<0.000000e+00> : vector<16xf32>
    %308 = vector.multi_reduction <add>, %307, %cst_126 [1] : vector<16x8xf32> to vector<16xf32>
    %309 = vector.shape_cast %308 : vector<16xf32> to vector<16x1xf32>
    %310 = tpu.reciprocal %309 {approx = true} : vector<16x1xf32> -> vector<16x1xf32>
    %311 = vector.broadcast %310 : vector<16x1xf32> to vector<16x8xf32>
    %312 = arith.mulf %307, %311 : vector<16x8xf32>
    %313 = arith.truncf %312 : vector<16x8xf32> to vector<16x8xbf16>
    %cst_127 = arith.constant dense<0.000000e+00> : vector<16x8xf32>
    %314 = tpu.matmul %313, %301, %cst_127 {dimension_numbers = #tpu.dot_dimension_numbers<[1], [0], [0], [1], [0, 0, 1, 1], [], []>} : vector<16x8xbf16>, vector<8x8xbf16>, vector<16x8xf32> -> vector<16x8xf32>
    %c16_128 = arith.constant 16 : index
    %c16_129 = arith.constant 16 : index
    %315 = vector.load %arg23[%c16_128, %c16_129] : memref<32x32xf32, #tpu.memory_space<vmem>>, vector<16x8xf32>
    tpu.vector_store %arg23[%c16_128, %c16_129], %314 {strides = array<i32>} : memref<32x32xf32, #tpu.memory_space<vmem>>, vector<16x8xf32>,
    %316 = vector.extract_strided_slice %253 {offsets = [0, 24], sizes = [16, 8], strides = [1, 1]} : vector<16x32xf32> to vector<16x8xf32>
    %317 = arith.truncf %316 : vector<16x8xf32> to vector<16x8xbf16>
    %318 = vector.extract_strided_slice %254 {offsets = [0, 24], sizes = [8, 8], strides = [1, 1]} : vector<8x32xf32> to vector<8x8xf32>
    %319 = arith.truncf %318 : vector<8x8xf32> to vector<8x8xbf16>
    %320 = vector.extract_strided_slice %255 {offsets = [0, 24], sizes = [8, 8], strides = [1, 1]} : vector<8x32xf32> to vector<8x8xf32>
    %321 = arith.truncf %320 : vector<8x8xf32> to vector<8x8xbf16>
    %cst_130 = arith.constant dense<0.000000e+00> : vector<16x8xf32>
    %322 = tpu.matmul %317, %319, %cst_130 {dimension_numbers = #tpu.dot_dimension_numbers<[1], [1], [0], [0], [0, 0, 1, 0], [], []>} : vector<16x8xbf16>, vector<8x8xbf16>, vector<16x8xf32> -> vector<16x8xf32>
    %cst_131 = arith.constant dense<0xFF800000> : vector<16xf32>
    %323 = vector.multi_reduction <maximumf>, %322, %cst_131 [1] : vector<16x8xf32> to vector<16xf32>
    %324 = vector.shape_cast %323 : vector<16xf32> to vector<16x1xf32>
    %325 = vector.broadcast %324 : vector<16x1xf32> to vector<16x8xf32>
    %326 = arith.subf %322, %325 : vector<16x8xf32>
    %327 = math.exp %326 : vector<16x8xf32>
    %cst_132 = arith.constant dense<0.000000e+00> : vector<16xf32>
    %328 = vector.multi_reduction <add>, %327, %cst_132 [1] : vector<16x8xf32> to vector<16xf32>
    %329 = vector.shape_cast %328 : vector<16xf32> to vector<16x1xf32>
    %330 = tpu.reciprocal %329 {approx = true} : vector<16x1xf32> -> vector<16x1xf32>
    %331 = vector.broadcast %330 : vector<16x1xf32> to vector<16x8xf32>
    %332 = arith.mulf %327, %331 : vector<16x8xf32>
    %333 = arith.truncf %332 : vector<16x8xf32> to vector<16x8xbf16>
    %cst_133 = arith.constant dense<0.000000e+00> : vector<16x8xf32>
    %334 = tpu.matmul %333, %321, %cst_133 {dimension_numbers = #tpu.dot_dimension_numbers<[1], [0], [0], [1], [0, 0, 1, 1], [], []>} : vector<16x8xbf16>, vector<8x8xbf16>, vector<16x8xf32> -> vector<16x8xf32>
    %c16_134 = arith.constant 16 : index
    %c24_135 = arith.constant 24 : index
    %335 = vector.load %arg23[%c16_134, %c24_135] : memref<32x32xf32, #tpu.memory_space<vmem>>, vector<16x8xf32>
    tpu.vector_store %arg23[%c16_134, %c24_135], %334 {strides = array<i32>} : memref<32x32xf32, #tpu.memory_space<vmem>>, vector<16x8xf32>,
    %c0_136 = arith.constant 0 : index
    %c0_137 = arith.constant 0 : index
    %336 = vector.load %arg23[%c0_136, %c0_137] : memref<32x32xf32, #tpu.memory_space<vmem>>, vector<32x32xf32>
    %337 = arith.truncf %336 : vector<32x32xf32> to vector<32x32xbf16>
    %c0_138 = arith.constant 0 : index
    %c0_139 = arith.constant 0 : index
    %338 = vector.load %arg11[%c0_138, %c0_139] : memref<32x32xbf16, #tpu.memory_space<vmem>>, vector<32x32xbf16>
    %cst_140 = arith.constant dense<0.000000e+00> : vector<32x32xf32>
    %339 = tpu.matmul %337, %338, %cst_140 {dimension_numbers = #tpu.dot_dimension_numbers<[1], [0], [0], [1], [0, 0, 1, 1], [], []>} : vector<32x32xbf16>, vector<32x32xbf16>, vector<32x32xf32> -> vector<32x32xf32>
    %c0_141 = arith.constant 0 : index
    %c0_142 = arith.constant 0 : index
    %340 = vector.load %arg12[%c0_141, %c0_142] : memref<1x32xf32, #tpu.memory_space<vmem>>, vector<1x32xf32>
    %341 = vector.broadcast %340 : vector<1x32xf32> to vector<32x32xf32>
    %342 = arith.addf %339, %341 : vector<32x32xf32>
    %343 = arith.addf %0, %342 : vector<32x32xf32>
    %c0_143 = arith.constant 0 : index
    %c0_144 = arith.constant 0 : index
    %344 = vector.load %arg13[%c0_143, %c0_144] : memref<1x32xf32, #tpu.memory_space<vmem>>, vector<1x32xf32>
    %345 = vector.broadcast %344 : vector<1x32xf32> to vector<32x32xf32>
    %346 = arith.mulf %343, %345 : vector<32x32xf32>
    %c0_145 = arith.constant 0 : index
    %c0_146 = arith.constant 0 : index
    %347 = vector.load %arg14[%c0_145, %c0_146] : memref<1x32xf32, #tpu.memory_space<vmem>>, vector<1x32xf32>
    %348 = vector.broadcast %347 : vector<1x32xf32> to vector<32x32xf32>
    %349 = arith.addf %346, %348 : vector<32x32xf32>
    %350 = arith.truncf %349 : vector<32x32xf32> to vector<32x32xbf16>
    %c0_147 = arith.constant 0 : index
    %c0_148 = arith.constant 0 : index
    %351 = vector.load %arg15[%c0_147, %c0_148] : memref<32x64xbf16, #tpu.memory_space<vmem>>, vector<32x64xbf16>
    %cst_149 = arith.constant dense<0.000000e+00> : vector<32x64xf32>
    %352 = tpu.matmul %350, %351, %cst_149 {dimension_numbers = #tpu.dot_dimension_numbers<[1], [0], [0], [1], [0, 0, 1, 1], [], []>} : vector<32x32xbf16>, vector<32x64xbf16>, vector<32x64xf32> -> vector<32x64xf32>
    %c0_150 = arith.constant 0 : index
    %c0_151 = arith.constant 0 : index
    %353 = vector.load %arg16[%c0_150, %c0_151] : memref<1x64xf32, #tpu.memory_space<vmem>>, vector<1x64xf32>
    %354 = vector.broadcast %353 : vector<1x64xf32> to vector<32x64xf32>
    %355 = arith.addf %352, %354 : vector<32x64xf32>
    %cst_152 = arith.constant 5.000000e-01 : f32
    %356 = vector.broadcast %cst_152 : f32 to vector<32x64xf32>
    %357 = arith.mulf %356, %355 : vector<32x64xf32>
    %cst_153 = arith.constant 4.471500e-02 : f32
    %358 = vector.broadcast %cst_153 : f32 to vector<32x64xf32>
    %359 = arith.mulf %358, %355 : vector<32x64xf32>
    %360 = arith.mulf %359, %355 : vector<32x64xf32>
    %361 = arith.mulf %360, %355 : vector<32x64xf32>
    %362 = arith.addf %355, %361 : vector<32x64xf32>
    %cst_154 = arith.constant 0.797884583 : f32
    %363 = vector.broadcast %cst_154 : f32 to vector<32x64xf32>
    %364 = arith.mulf %363, %362 : vector<32x64xf32>
    %365 = math.tanh %364 : vector<32x64xf32>
    %cst_155 = arith.constant 1.000000e+00 : f32
    %366 = vector.broadcast %cst_155 : f32 to vector<32x64xf32>
    %367 = arith.addf %366, %365 : vector<32x64xf32>
    %368 = arith.mulf %357, %367 : vector<32x64xf32>
    %369 = arith.truncf %368 : vector<32x64xf32> to vector<32x64xbf16>
    %c0_156 = arith.constant 0 : index
    %c0_157 = arith.constant 0 : index
    %370 = vector.load %arg17[%c0_156, %c0_157] : memref<64x32xbf16, #tpu.memory_space<vmem>>, vector<64x32xbf16>
    %cst_158 = arith.constant dense<0.000000e+00> : vector<32x32xf32>
    %371 = tpu.matmul %369, %370, %cst_158 {dimension_numbers = #tpu.dot_dimension_numbers<[1], [0], [0], [1], [0, 0, 1, 1], [], []>} : vector<32x64xbf16>, vector<64x32xbf16>, vector<32x32xf32> -> vector<32x32xf32>
    %c0_159 = arith.constant 0 : index
    %c0_160 = arith.constant 0 : index
    %372 = vector.load %arg18[%c0_159, %c0_160] : memref<1x32xf32, #tpu.memory_space<vmem>>, vector<1x32xf32>
    %373 = vector.broadcast %372 : vector<1x32xf32> to vector<32x32xf32>
    %374 = arith.addf %371, %373 : vector<32x32xf32>
    %375 = arith.addf %349, %374 : vector<32x32xf32>
    %c0_161 = arith.constant 0 : index
    %c0_162 = arith.constant 0 : index
    %376 = vector.load %arg19[%c0_161, %c0_162] : memref<1x32xf32, #tpu.memory_space<vmem>>, vector<1x32xf32>
    %377 = vector.broadcast %376 : vector<1x32xf32> to vector<32x32xf32>
    %378 = arith.mulf %375, %377 : vector<32x32xf32>
    %c0_163 = arith.constant 0 : index
    %c0_164 = arith.constant 0 : index
    %379 = vector.load %arg20[%c0_163, %c0_164] : memref<1x32xf32, #tpu.memory_space<vmem>>, vector<1x32xf32>
    %380 = vector.broadcast %379 : vector<1x32xf32> to vector<32x32xf32>
    %381 = arith.addf %378, %380 : vector<32x32xf32>
    %c0_165 = arith.constant 0 : index
    %c0_166 = arith.constant 0 : index
    %382 = vector.load %arg21[%c0_165, %c0_166] : memref<32x32xf32, #tpu.memory_space<vmem>>, vector<32x32xf32>
    tpu.vector_store %arg21[%c0_165, %c0_166], %381 {strides = array<i32>} : memref<32x32xf32, #tpu.memory_space<vmem>>, vector<32x32xf32>,
    return
  }
  func.func @transform_0(%arg0: i32) -> (i32, i32) {
    %c0_i32 = arith.constant 0 : i32
    %c0_i32_0 = arith.constant 0 : i32
    return %arg0, %c0_i32 : i32, i32
  }
  func.func @transform_1(%arg0: i32) -> (i32, i32) {
    %c0_i32 = arith.constant 0 : i32
    %c0_i32_0 = arith.constant 0 : i32
    %c0_i32_1 = arith.constant 0 : i32
    return %c0_i32, %c0_i32_0 : i32, i32
  }
  func.func @transform_2(%arg0: i32) -> (i32, i32) {
    %c0_i32 = arith.constant 0 : i32
    %c0_i32_0 = arith.constant 0 : i32
    %c0_i32_1 = arith.constant 0 : i32
    return %c0_i32, %c0_i32_0 : i32, i32
  }
  func.func @transform_3(%arg0: i32) -> (i32, i32, i32) {
    %c0_i32 = arith.constant 0 : i32
    %c0_i32_0 = arith.constant 0 : i32
    %c0_i32_1 = arith.constant 0 : i32
    %c0_i32_2 = arith.constant 0 : i32
    return %c0_i32, %c0_i32_0, %c0_i32_1 : i32, i32, i32
  }
  func.func @transform_4(%arg0: i32) -> (i32, i32) {
    %c0_i32 = arith.constant 0 : i32
    %c0_i32_0 = arith.constant 0 : i32
    %c0_i32_1 = arith.constant 0 : i32
    return %c0_i32, %c0_i32_0 : i32, i32
  }
  func.func @transform_5(%arg0: i32) -> (i32, i32) {
    %c0_i32 = arith.constant 0 : i32
    %c0_i32_0 = arith.constant 0 : i32
    %c0_i32_1 = arith.constant 0 : i32
    return %c0_i32, %c0_i32_0 : i32, i32
  }
  func.func @transform_6(%arg0: i32) -> (i32, i32) {
    %c0_i32 = arith.constant 0 : i32
    %c0_i32_0 = arith.constant 0 : i32
    %c0_i32_1 = arith.constant 0 : i32
    return %c0_i32, %c0_i32_0 : i32, i32
  }
  func.func @transform_7(%arg0: i32) -> (i32, i32) {
    %c0_i32 = arith.constant 0 : i32
    %c0_i32_0 = arith.constant 0 : i32
    %c0_i32_1 = arith.constant 0 : i32
    return %c0_i32, %c0_i32_0 : i32, i32
  }
  func.func @transform_8(%arg0: i32) -> (i32, i32) {
    %c0_i32 = arith.constant 0 : i32
    %c0_i32_0 = arith.constant 0 : i32
    %c0_i32_1 = arith.constant 0 : i32
    return %c0_i32, %c0_i32_0 : i32, i32
  }
  func.func @transform_9(%arg0: i32) -> (i32, i32) {
    %c0_i32 = arith.constant 0 : i32
    %c0_i32_0 = arith.constant 0 : i32
    %c0_i32_1 = arith.constant 0 : i32
    return %c0_i32, %c0_i32_0 : i32, i32
  }
  func.func @transform_10(%arg0: i32) -> (i32, i32) {
    %c0_i32 = arith.constant 0 : i32
    %c0_i32_0 = arith.constant 0 : i32
    %c0_i32_1 = arith.constant 0 : i32
    return %c0_i32, %c0_i32_0 : i32, i32
  }
  func.func @transform_11(%arg0: i32) -> (i32, i32) {
    %c0_i32 = arith.constant 0 : i32
    %c0_i32_0 = arith.constant 0 : i32
    %c0_i32_1 = arith.constant 0 : i32
    return %c0_i32, %c0_i32_0 : i32, i32
  }
  func.func @transform_12(%arg0: i32) -> (i32, i32) {
    %c0_i32 = arith.constant 0 : i32
    %c0_i32_0 = arith.constant 0 : i32
    %c0_i32_1 = arith.constant 0 : i32
    return %c0_i32, %c0_i32_0 : i32, i32
  }
  func.func @transform_13(%arg0: i32) -> (i32, i32) {
    %c0_i32 = arith.constant 0 : i32
    %c0_i32_0 = arith.constant 0 : i32
    %c0_i32_1 = arith.constant 0 : i32
    return %c0_i32, %c0_i32_0 : i32, i32
  }
  func.func @transform_14(%arg0: i32) -> (i32, i32) {
    %c0_i32 = arith.constant 0 : i32
    %c0_i32_0 = arith.constant 0 : i32
    %c0_i32_1 = arith.constant 0 : i32
    return %c0_i32, %c0_i32_0 : i32, i32
  }
  func.func @transform_15(%arg0: i32) -> (i32, i32) {
    %c0_i32 = arith.constant 0 : i32
    %c0_i32_0 = arith.constant 0 : i32
    %c0_i32_1 = arith.constant 0 : i32
    return %c0_i32, %c0_i32_0 : i32, i32
  }
  func.func @transform_16(%arg0: i32) -> (i32, i32) {
    %c0_i32 = arith.constant 0 : i32
    %c0_i32_0 = arith.constant 0 : i32
    %c0_i32_1 = arith.constant 0 : i32
    return %c0_i32, %c0_i32_0 : i32, i32
  }
  func.func @transform_17(%arg0: i32) -> (i32, i32) {
    %c0_i32 = arith.constant 0 : i32
    %c0_i32_0 = arith.constant 0 : i32
    %c0_i32_1 = arith.constant 0 : i32
    return %c0_i32, %c0_i32_0 : i32, i32
  }
  func.func @transform_18(%arg0: i32) -> (i32, i32) {
    %c0_i32 = arith.constant 0 : i32
    %c0_i32_0 = arith.constant 0 : i32
    %c0_i32_1 = arith.constant 0 : i32
    return %c0_i32, %c0_i32_0 : i32, i32
  }
  func.func @transform_19(%arg0: i32) -> (i32, i32) {
    %c0_i32 = arith.constant 0 : i32
    %c0_i32_0 = arith.constant 0 : i32
    %c0_i32_1 = arith.constant 0 : i32
    return %c0_i32, %c0_i32_0 : i32, i32
  }
  func.func @transform_20(%arg0: i32) -> (i32, i32) {
    %c0_i32 = arith.constant 0 : i32
    %c0_i32_0 = arith.constant 0 : i32
    return %arg0, %c0_i32 : i32, i32
  }
}

</mosaic_0001>

<bundles_post_ra>
// kernel: _fold_and_call.1
= control target key start
LH: loop header
LB: loop body
LE: loop exit
PB: predicated region body
PF: predicated region fallthrough
CT: control target
= control target key end

     0   :  { %s4005_s0 = inlined_call_operand.vmem [shape: f32[32,32], index: 0, kind: input, shape index: {}]   ;;  %s4006_s1 = inlined_call_operand.vmem [shape: bf16[32,32], index: 1, kind: input, shape index: {}]   ;;  %s4007_s2 = inlined_call_operand.vmem [shape: f32[1,32], index: 2, kind: input, shape index: {}]   ;;  %s4008_s3 = inlined_call_operand.vmem [shape: bf16[4,8,8], index: 3, kind: input, shape index: {}]   ;;  %s4009_s4 = inlined_call_operand.vmem [shape: bf16[32,32], index: 4, kind: input, shape index: {}]   ;;  %s4010_s5 = inlined_call_operand.vmem [shape: f32[1,32], index: 5, kind: input, shape index: {}]   ;;  %s4011_s6 = inlined_call_operand.vmem [shape: bf16[32,32], index: 6, kind: input, shape index: {}]   ;;  %s4012_s7 = inlined_call_operand.vmem [shape: f32[1,32], index: 7, kind: input, shape index: {}]   ;;  %s4013_s8 = inlined_call_operand.vmem [shape: bf16[32,32], index: 8, kind: input, shape index: {}]   ;;  %s4014_s9 = inlined_call_operand.vmem [shape: f32[1,32], index: 9, kind: input, shape index: {}]   ;;  %s4015_s10 = inlined_call_operand.vmem [shape: bf16[32,32], index: 10, kind: input, shape index: {}]   ;;  %s4016_s11 = inlined_call_operand.vmem [shape: f32[1,32], index: 11, kind: input, shape index: {}]   ;;  %s4017_s12 = inlined_call_operand.vmem [shape: f32[1,32], index: 12, kind: input, shape index: {}]   ;;  %s4018_s13 = inlined_call_operand.vmem [shape: f32[1,32], index: 13, kind: input, shape index: {}]   ;;  %s4019_s14 = inlined_call_operand.vmem [shape: bf16[32,64], index: 14, kind: input, shape index: {}]   ;;  %s4020_s15 = inlined_call_operand.vmem [shape: f32[1,64], index: 15, kind: input, shape index: {}]   ;;  %s4021_s16 = inlined_call_operand.vmem [shape: bf16[64,32], index: 16, kind: input, shape index: {}]   ;;  %s4022_s17 = inlined_call_operand.vmem [shape: f32[1,32], index: 17, kind: input, shape index: {}]   ;;  %s4023_s18 = inlined_call_operand.vmem [shape: f32[1,32], index: 18, kind: input, shape index: {}]   ;;  %s4024_s19 = inlined_call_operand.vmem [shape: f32[1,32], index: 19, kind: input, shape index: {}]   ;;  %s4025_s20 = inlined_call_operand.hbm [shape: f32[32,32], index: 20, kind: output, shape index: {}]  }
   0x1   :  { %4030 = sst [smem:[#allocation7_spill]] %s4005_s0 }
   0x2   :  { %4031 = sst [smem:[#allocation8_spill]] %s4006_s1 }
   0x3   :  { %4032 = sst [smem:[#allocation9_spill]] %s4007_s2 }
   0x4   :  { %4033 = sst [smem:[#allocation10_spill]] %s4008_s3 }
   0x5   :  { %4034 = sst [smem:[#allocation11_spill]] %s4009_s4 }
   0x6   :  { %s4035_s23 = sld [smem:[#allocation8_spill]]  ;;  %s4036_s26 = sld [smem:[#allocation7_spill]]  ;;  %vm96_vm0 = vcmask 261120  }
   0x7   :  { %s4037_s22 = sld [smem:[#allocation11_spill]] }
   0xc   :  { %v3085_v0 = vld [vmem:[%s4035_s23] sm:$0xff]   ;;  %v3086_v1 = vld [vmem:[%s4035_s23 + $0x8] sm:$0xff]   ;;  %v69_v4 = vld [vmem:[%s4036_s26 + $0x10] sm:$0xff] }
   0xd   :  { %2823 = vmatprep.subr.bf16.mxu1 %v3085_v0  ;;  %v67_v2 = vld [vmem:[%s4036_s26] sm:$0xff]  ;;  %v68_v3 = vld [vmem:[%s4036_s26 + $0x8] sm:$0xff]  ;;  %v70_v6 = vld [vmem:[%s4036_s26 + $0x18] sm:$0xff] }
   0xe   :  { %2824 = vmatpush3.bf16.msra.mxu1 %v3085_v0  ;;  %v71_v5 = vpack.c.bf16 %v68_v3, %v67_v2  ;;  %v3087_v7 = vld [vmem:[%s4037_s22] sm:$0xff]   ;;  %v72_v8 = vpack.c.bf16 %v70_v6, %v69_v4 }
   0xf   :  { %2825 = vmatprep.subr.bf16.mxu1 %v3086_v1 }
  0x10   :  { %2827 = vmatprep.mubr.msk.bf16.mxu1 %vm96_vm0, %v71_v5 }
  0x12   :  { %2826 = vmatpush3.bf16.msra.mxu1 %v3086_v1 }
  0x13   :  { %2831 = vmatprep.subr.bf16.mxu1 %v3087_v7 }
  0x15   :  { %2828 = vmatmul.mubr.msk.bf16.vlgmr.msra.gmra.mrb[0].mxu1 %vm96_vm0, %v72_v8 }
  0x16   :  { %2832 = vmatpush3.bf16.msra.mxu1 %v3087_v7  ;;  %2835 = vmatprep.mubr.msk.bf16.mxu1 %vm96_vm0, %v71_v5 }
  0x17   :  { %25 = vsyncpa [#allocation5], 0  ;;  %v3088_v9 = vld [vmem:[%s4037_s22 + $0x8] sm:$0xff]   ;;  %v3233_v10 = vmov 0.0   ;;  %vm3234_vm1 = vmmov 0   ;;  %s4038_s3 = sld [smem:[#allocation9_spill]] }
  0x18   :  { %2833 = vmatprep.subr.bf16.mxu1 %v3088_v9  ;;  %2839 = vmatprep.subr.bf16.mxu0 %v3233_v10  ;;  %vm226_vm2 = vcmask 64512   ;;  %s3235_s27 = smov 104   ;;  %s3236_s28 = smov 120   ;;  %vm273_vm3 = vcmask 130048   ;;  %vm441_vm4 = vcmask 130112   ;;  %vm553_vm5 = vcmask 195712  }
  0x19   :  { %2841 = vmatprep.mubr.msk.bf16.mxu0 %vm3234_vm1, %v3233_v10  ;;  %s3237_s4 = smov 112   ;;  %s4039_s0 = sld [smem:[#allocation10_spill]]  ;;  %vm665_vm6 = vcmask 261312   ;;  %vm1312_vm7 = vcmask 1043456   ;;  %vm2552_vm8 = vcmask 523264  }
  0x1a   :  { %2834 = vmatpush3.bf16.msra.mxu1 %v3088_v9  ;;  %s3239_s2 = smov 16   ;;  %s3240_s21 = smov 24  }
  0x1b   :  { %2845 = vmatprep.subr.bf16.mxu1 %v3233_v10 }
  0x1d   :  { %2836 = vmatmul.mubr.msk.bf16.vlgmr.msra.gmra.mrb[4].mxu1 %vm96_vm0, %v72_v8  ;;  %v2654_v12 = vld [vmem:[%s4038_s3] ss:$0 sm:$0xff] }
  0x1e   :  { %2847 = vmatprep.mubr.msk.bf16.mxu1 %vm3234_vm1, %v3233_v10 }
  0x1f   :  { %v225_v23 = vld [vmem:[%s4039_s0] sm:$0xf]  ;;  %v2666_v27 = vld [vmem:[%s4039_s0 + $0x4] sm:$0xf]  ;;  %v2669_v30 = vld [vmem:[%s4039_s0 + $0x8] sm:$0xf] }
  0x20   :  { %v2672_v32 = vld [vmem:[%s4039_s0 + $0xc] sm:$0xf]  ;;  %v668_v35 = vld [vmem:[%s4039_s0] sm:$0xf]  ;;  %v2677_v38 = vld [vmem:[%s4039_s0 + $0x4] sm:$0xf] }
  0x21   :  { %v2680_v41 = vld [vmem:[%s4039_s0 + $0x8] sm:$0xf]  ;;  %v2683_v43 = vld [vmem:[%s4039_s0 + $0xc] sm:$0xf] }
  0xe8   :  { %v2829_v11 = vpop.f32.mrb[0].mxu1 }
  0xe9   :  { %v137_v13 = vpop.f32.mrb[1].mxu1  ;;  %v146_v15 = vadd.f32 %v2829_v11, %v2654_v12 }
  0xea   :  { %v2830_v14 = vpop.f32.mrb[2].mxu1  ;;  %v138_v18 = vadd.f32 %v2654_v12, %v137_v13 }
  0xeb   :  { %v149_v16 = vadd.f32 %v2830_v14, %v2654_v12  ;;  %v140_v17 = vpop.f32.mrb[3].mxu1 }
  0xec   :  { %v141_v19 = vadd.f32 %v2654_v12, %v140_v17 }
  0xed   :  { %v3385_v20 = vpack.c.bf16 %v149_v16, %v146_v15 }
  0xee   :  { %v224_v21 = vpack.c.bf16 %v141_v19, %v138_v18 }
  0xef   :  { %v673_v33 = vsel %vm226_vm2, %v3385_v20, 0 }
  0xf0   :  { %557 = vrot.lane.b32.xlu1 %v224_v21, %s3235_s27  ;;  %333 = vrot.lane.b32.xlu0 %v224_v21, %s3236_s28  ;;  %v231_v22 = vsel %vm226_vm2, %v224_v21, 0 }
  0xf1   :  { %2846 = vmatpush3.bf16.msra.mxu1 %v224_v21  ;;  %2840 = vmatpush3.bf16.xpose.msra.mxu0 %v231_v22 }
  0xf2   :  { %2851 = vmatprep.subr.bf16.mxu0 %v3233_v10  ;;  %2857 = vmatprep.subr.bf16.mxu1 %v3233_v10 }
  0xf4   :  { %773 = vrot.lane.b32.xlu1 %v3385_v20, %s3236_s28  ;;  %445 = vrot.lane.b32.xlu0 %v224_v21, %s3237_s4 }
  0xf8   :  { %993 = vrot.lane.b32.xlu1 %v3385_v20, %s3235_s27  ;;  %883 = vrot.lane.b32.xlu0 %v3385_v20, %s3237_s4 }
  0xf9   :  { %2842 = vmatmul.mubr.msk.bf16.vlgmr.msra.gmra.mrb[0].mxu0 %vm226_vm2, %v225_v23 }
  0xfa   :  { %2853 = vmatprep.mubr.msk.bf16.mxu0 %vm3234_vm1, %v3233_v10 }
 0x162   :  { %v3405_v24 = vpop.permute.xlu0 %333  ;;  %v3421_v29 = vpop.permute.xlu1 %557 }
 0x163   :  { %v339_v25 = vsel %vm226_vm2, %v3405_v24, 0  ;;  %v563_v31 = vsel %vm226_vm2, %v3421_v29, 0 }
 0x164   :  { %2852 = vmatpush3.bf16.xpose.msra.mxu0 %v339_v25 }
 0x165   :  { %2863 = vmatprep.subr.bf16.mxu0 %v3233_v10 }
 0x166   :  { %v3410_v26 = vpop.permute.xlu0 %445  ;;  %v3441_v34 = vpop.permute.xlu1 %773 }
 0x167   :  { %v451_v28 = vsel %vm226_vm2, %v3410_v26, 0  ;;  %v779_v36 = vsel %vm226_vm2, %v3441_v34, 0 }
 0x16a   :  { %v3452_v37 = vpop.permute.xlu0 %883  ;;  %v3463_v40 = vpop.permute.xlu1 %993 }
 0x16b   :  { %2854 = vmatmul.mubr.msk.bf16.vlgmr.msra.gmra.mrb[4].mxu0 %vm226_vm2, %v2666_v27  ;;  %v889_v39 = vsel %vm226_vm2, %v3452_v37, 0  ;;  %v999_v42 = vsel %vm226_vm2, %v3463_v40, 0 }
 0x16c   :  { %2864 = vmatpush3.bf16.xpose.msra.mxu0 %v451_v28  ;;  %2865 = vmatprep.mubr.msk.bf16.mxu0 %vm3234_vm1, %v3233_v10 }
 0x16d   :  { %2875 = vmatprep.subr.bf16.mxu0 %v3233_v10 }
 0x173   :  { %2866 = vmatmul.mubr.msk.bf16.vlgmr.msra.gmra.mrb[8].mxu0 %vm226_vm2, %v2669_v30 }
 0x174   :  { %2876 = vmatpush3.bf16.xpose.msra.mxu0 %v563_v31  ;;  %2877 = vmatprep.mubr.msk.bf16.mxu0 %vm3234_vm1, %v3233_v10 }
 0x175   :  { %2887 = vmatprep.subr.bf16.mxu0 %v3233_v10 }
 0x17b   :  { %2878 = vmatmul.mubr.msk.bf16.vlgmr.msra.gmra.mrb[12].mxu0 %vm226_vm2, %v2672_v32 }
 0x17c   :  { %2888 = vmatpush3.bf16.xpose.msra.mxu0 %v673_v33  ;;  %2889 = vmatprep.mubr.msk.bf16.mxu0 %vm3234_vm1, %v3233_v10 }
 0x17d   :  { %2899 = vmatprep.subr.bf16.mxu0 %v3233_v10 }
 0x183   :  { %2890 = vmatmul.mubr.msk.bf16.vlgmr.msra.gmra.mrb[16].mxu0 %vm226_vm2, %v668_v35 }
 0x184   :  { %2900 = vmatpush3.bf16.xpose.msra.mxu0 %v779_v36  ;;  %2901 = vmatprep.mubr.msk.bf16.mxu0 %vm3234_vm1, %v3233_v10 }
 0x185   :  { %2911 = vmatprep.subr.bf16.mxu0 %v3233_v10 }
 0x18b   :  { %2902 = vmatmul.mubr.msk.bf16.vlgmr.msra.gmra.mrb[20].mxu0 %vm226_vm2, %v2677_v38 }
 0x18c   :  { %2912 = vmatpush3.bf16.xpose.msra.mxu0 %v889_v39  ;;  %2913 = vmatprep.mubr.msk.bf16.mxu0 %vm3234_vm1, %v3233_v10 }
 0x18d   :  { %2923 = vmatprep.subr.bf16.mxu0 %v3233_v10 }
 0x193   :  { %2914 = vmatmul.mubr.msk.bf16.vlgmr.msra.gmra.mrb[24].mxu0 %vm226_vm2, %v2680_v41 }
 0x194   :  { %2924 = vmatpush3.bf16.xpose.msra.mxu0 %v999_v42  ;;  %2925 = vmatprep.mubr.msk.bf16.mxu0 %vm3234_vm1, %v3233_v10 }
 0x195   :  { %2935 = vmatprep.subr.bf16.mxu0 %v3233_v10 }
 0x19b   :  { %2926 = vmatmul.mubr.msk.bf16.vlgmr.msra.gmra.mrb[28].mxu0 %vm226_vm2, %v2683_v43 }
 0x19c   :  { %2939 = vmatprep.mubr.msk.bf16.mxu0 %vm3234_vm1, %v3233_v10 }
 0x1cc   :  { %v267_v44 = vpop.f32.mrb[0].mxu0 }
 0x1cd   :  { %v274_v45 = vsel %vm273_vm3, %v267_v44, -inf  ;;  %v2843_v46 = vpop.f32.mrb[1].mxu0 }
 0x1ce   :  { %275 = vmax.xlane.f32.xlu0 %v274_v45  ;;  %v270_v47 = vpop.f32.mrb[2].mxu0 }
 0x1cf   :  { %v2844_v48 = vpop.f32.mrb[3].mxu0 }
 0x23e   :  { %v375_v49 = vpop.f32.mrb[4].mxu0 }
 0x23f   :  { %v2855_v50 = vpop.f32.mrb[5].mxu0  ;;  %v381_v51 = vsel %vm273_vm3, %v375_v49, -inf }
 0x240   :  { %382 = vmax.xlane.f32.xlu1 %v381_v51  ;;  %v378_v52 = vpop.f32.mrb[6].mxu0 }
 0x241   :  { %v2856_v53 = vpop.f32.mrb[7].mxu0 }
 0x246   :  { %v487_v54 = vpop.f32.mrb[8].mxu0 }
 0x247   :  { %v2867_v55 = vpop.f32.mrb[9].mxu0  ;;  %v493_v56 = vsel %vm273_vm3, %v487_v54, -inf }
 0x248   :  { %494 = vmax.xlane.f32.xlu0 %v493_v56  ;;  %v490_v57 = vpop.f32.mrb[10].mxu0 }
 0x249   :  { %v2868_v58 = vpop.f32.mrb[11].mxu0 }
 0x24e   :  { %v599_v59 = vpop.f32.mrb[12].mxu0 }
 0x24f   :  { %v2879_v60 = vpop.f32.mrb[13].mxu0  ;;  %v605_v61 = vsel %vm273_vm3, %v599_v59, -inf }
 0x250   :  { %606 = vmax.xlane.f32.xlu0 %v605_v61  ;;  %v602_v62 = vpop.f32.mrb[14].mxu0 }
 0x251   :  { %v2880_v63 = vpop.f32.mrb[15].mxu0 }
 0x256   :  { %v709_v0 = vpop.f32.mrb[16].mxu0 }
 0x257   :  { %v2891_v1 = vpop.f32.mrb[17].mxu0  ;;  %v715_v2 = vsel %vm273_vm3, %v709_v0, -inf }
 0x258   :  { %716 = vmax.xlane.f32.xlu1 %v715_v2  ;;  %v712_v3 = vpop.f32.mrb[18].mxu0 }
 0x259   :  { %v2892_v4 = vpop.f32.mrb[19].mxu0 }
 0x25b   :  { %v276_v5 = vpop.xlane.xlu0 %275 }
 0x25c   :  { %v277_v6 = vsub.f32 %v267_v44, %v276_v5 }
 0x25e   :  { %v278_v7 = vmul.f32 1.442695, %v277_v6  ;;  %v815_v8 = vpop.f32.mrb[20].mxu0 }
 0x25f   :  { %v2903_v9 = vpop.f32.mrb[21].mxu0  ;;  %v821_v11 = vsel %vm273_vm3, %v815_v8, -inf }
 0x260   :  { %3101 = vpow2.f32 %v278_v7  ;;  %822 = vmax.xlane.f32.xlu0 %v821_v11  ;;  %v818_v12 = vpop.f32.mrb[22].mxu0  ;;  %v2659_v9 = vld [vmem:[%s4010_s5] ss:$0 sm:$0xff]  ;;  %s3238_s5 = smov 8  }
 0x261   :  { %v2904_v13 = vpop.f32.mrb[23].mxu0 }
 0x266   :  { %v925_v14 = vpop.f32.mrb[24].mxu0 }
 0x267   :  { %v2915_v15 = vpop.f32.mrb[25].mxu0  ;;  %v931_v16 = vsel %vm273_vm3, %v925_v14, -inf }
 0x268   :  { %932 = vmax.xlane.f32.xlu1 %v931_v16  ;;  %v928_v17 = vpop.f32.mrb[26].mxu0 }
 0x269   :  { %v2916_v18 = vpop.f32.mrb[27].mxu0 }
 0x26a   :  { %v3102_v19 = vpop.eup %3101 }
 0x26b   :  { %v280_v21 = vsel %vm273_vm3, %v3102_v19, 0.0 }
 0x26c   :  { %281 = vadd.xlane.f32.xlu1 %v280_v21 }
 0x26e   :  { %v1035_v22 = vpop.f32.mrb[28].mxu0 }
 0x26f   :  { %v2927_v23 = vpop.f32.mrb[29].mxu0  ;;  %v1041_v25 = vsel %vm273_vm3, %v1035_v22, -inf }
 0x270   :  { %1042 = vmax.xlane.f32.xlu0 %v1041_v25  ;;  %v1038_v27 = vpop.f32.mrb[30].mxu0 }
 0x271   :  { %v2928_v28 = vpop.f32.mrb[31].mxu0 }
 0x2cd   :  { %v383_v30 = vpop.xlane.xlu1 %382 }
 0x2ce   :  { %v384_v31 = vsub.f32 %v375_v49, %v383_v30 }
 0x2d0   :  { %v385_v32 = vmul.f32 1.442695, %v384_v31 }
 0x2d2   :  { %3103 = vpow2.f32 %v385_v32 }
 0x2d5   :  { %v495_v33 = vpop.xlane.xlu0 %494 }
 0x2d6   :  { %v496_v35 = vsub.f32 %v487_v54, %v495_v33 }
 0x2d8   :  { %v497_v36 = vmul.f32 1.442695, %v496_v35 }
 0x2da   :  { %3105 = vpow2.f32 %v497_v36 }
 0x2dc   :  { %v3489_v38 = vpop.eup %3103 }
 0x2dd   :  { %v607_v39 = vpop.xlane.xlu0 %606  ;;  %v387_v41 = vsel %vm273_vm3, %v3489_v38, 0.0 }
 0x2de   :  { %v608_v42 = vsub.f32 %v599_v59, %v607_v39  ;;  %388 = vadd.xlane.f32.xlu0 %v387_v41 }
 0x2e0   :  { %v609_v43 = vmul.f32 1.442695, %v608_v42 }
 0x2e2   :  { %3107 = vpow2.f32 %v609_v43 }
 0x2e4   :  { %v3493_v44 = vpop.eup %3105 }
 0x2e5   :  { %v717_v45 = vpop.xlane.xlu1 %716  ;;  %v499_v46 = vsel %vm273_vm3, %v3493_v44, 0.0 }
 0x2e6   :  { %v718_v47 = vsub.f32 %v709_v0, %v717_v45  ;;  %500 = vadd.xlane.f32.xlu1 %v499_v46 }
 0x2e8   :  { %v719_v48 = vmul.f32 1.442695, %v718_v47 }
 0x2ea   :  { %3109 = vpow2.f32 %v719_v48 }
 0x2ec   :  { %v3497_v49 = vpop.eup %3107 }
 0x2ed   :  { %v823_v50 = vpop.xlane.xlu0 %822  ;;  %v611_v51 = vsel %vm273_vm3, %v3497_v49, 0.0 }
 0x2ee   :  { %v824_v52 = vsub.f32 %v815_v8, %v823_v50  ;;  %612 = vadd.xlane.f32.xlu0 %v611_v51  ;;  %v2837_v8 = vpop.f32.mrb[4].mxu1 }
 0x2ef   :  { %v218_v11 = vadd.f32 %v2837_v8, %v2659_v9  ;;  %v209_v12 = vpop.f32.mrb[5].mxu1  ;;  %v3089_v8 = vld [vmem:[%s4011_s6] sm:$0xff]  }
 0x2f0   :  { %v825_v53 = vmul.f32 1.442695, %v824_v52  ;;  %v210_v13 = vadd.f32 %v2659_v9, %v209_v12  ;;  %2936 = vmatpush3.bf16.msra.mxu0 %v3089_v8  ;;  %v3092_v12 = vld [vmem:[%s4013_s8 + $0x8] sm:$0xff]  }
 0x2f1   :  { %2937 = vmatprep.subr.bf16.mxu0 %v3233_v10 }
 0x2f2   :  { %3111 = vpow2.f32 %v825_v53 }
 0x2f4   :  { %v3501_v54 = vpop.eup %3109 }
 0x2f5   :  { %v933_v55 = vpop.xlane.xlu1 %932  ;;  %v721_v56 = vsel %vm273_vm3, %v3501_v54, 0.0 }
 0x2f6   :  { %v934_v57 = vsub.f32 %v925_v14, %v933_v55  ;;  %722 = vadd.xlane.f32.xlu1 %v721_v56 }
 0x2f8   :  { %v935_v58 = vmul.f32 1.442695, %v934_v57 }
 0x2f9   :  { %v282_v59 = vpop.xlane.xlu1 %281 }
 0x2fa   :  { %3113 = vpow2.f32 %v935_v58 }
 0x2fb   :  { %3115 = vrcp.f32 %v282_v59 }
 0x2fc   :  { %v3505_v60 = vpop.eup %3111 }
 0x2fd   :  { %v1043_v61 = vpop.xlane.xlu0 %1042  ;;  %v827_v62 = vsel %vm273_vm3, %v3505_v60, 0.0 }
 0x2fe   :  { %v1044_v63 = vsub.f32 %v1035_v22, %v1043_v61  ;;  %828 = vadd.xlane.f32.xlu0 %v827_v62 }
 0x300   :  { %v1045_v0 = vmul.f32 1.442695, %v1044_v63 }
 0x302   :  { %3117 = vpow2.f32 %v1045_v0 }
 0x304   :  { %v3509_v1 = vpop.eup %3113 }
 0x305   :  { %v3116_v2 = vpop.eup %3115  ;;  %v937_v3 = vsel %vm273_vm3, %v3509_v1, 0.0 }
 0x306   :  { %v284_v4 = vmul.f32 %v3116_v2, %v3102_v19  ;;  %938 = vadd.xlane.f32.xlu1 %v937_v3 }
 0x308   :  { %v285_v5 = vpack.c.bf16 %v284_v4, %v284_v4 }
 0x30a   :  { %2848 = vmatmul.mubr.msk.bf16.vlgmr.msra.gmra.mrb[8].mxu1 %vm273_vm3, %v285_v5 }
 0x30b   :  { %2858 = vmatpush3.bf16.msra.mxu1 %v3405_v24  ;;  %2859 = vmatprep.mubr.msk.bf16.mxu1 %vm3234_vm1, %v3233_v10  ;;  %v2838_v24 = vpop.f32.mrb[6].mxu1 }
 0x30c   :  { %v3517_v6 = vpop.eup %3117  ;;  %2869 = vmatprep.subr.bf16.mxu1 %v3233_v10  ;;  %v221_v14 = vadd.f32 %v2838_v24, %v2659_v9  ;;  %v212_v15 = vpop.f32.mrb[7].mxu1 }
 0x30d   :  { %v1047_v7 = vsel %vm273_vm3, %v3517_v6, 0.0  ;;  %v213_v16 = vadd.f32 %v2659_v9, %v212_v15  ;;  %v3090_v9 = vld [vmem:[%s4013_s8] sm:$0xff]  }
 0x30e   :  { %1048 = vadd.xlane.f32.xlu0 %v1047_v7  ;;  %v3525_v17 = vpack.c.bf16 %v221_v14, %v218_v11  ;;  %v3091_v11 = vld [vmem:[%s4011_s6 + $0x8] sm:$0xff]  }
 0x30f   :  { %v3527_v18 = vpack.c.bf16 %v213_v16, %v210_v13  ;;  %2938 = vmatpush3.bf16.msra.mxu0 %v3091_v11 }
 0x310   :  { %2951 = vmatprep.subr.bf16.mxu0 %v3233_v10 }
 0x36b   :  { %v389_v19 = vpop.xlane.xlu0 %388 }
 0x36c   :  { %3119 = vrcp.f32 %v389_v19 }
 0x373   :  { %v501_v21 = vpop.xlane.xlu1 %500 }
 0x374   :  { %3121 = vrcp.f32 %v501_v21 }
 0x376   :  { %v3120_v22 = vpop.eup %3119 }
 0x377   :  { %v391_v23 = vmul.f32 %v3120_v22, %v3489_v38 }
 0x379   :  { %v392_v25 = vpack.c.bf16 %v391_v23, %v391_v23 }
 0x37b   :  { %2860 = vmatmul.mubr.msk.bf16.vlgmr.msra.gmra.mrb[12].mxu1 %vm273_vm3, %v392_v25  ;;  %v613_v27 = vpop.xlane.xlu0 %612 }
 0x37c   :  { %2870 = vmatpush3.bf16.msra.mxu1 %v3410_v26  ;;  %3123 = vrcp.f32 %v613_v27  ;;  %2871 = vmatprep.mubr.msk.bf16.mxu1 %vm3234_vm1, %v3233_v10 }
 0x37d   :  { %2881 = vmatprep.subr.bf16.mxu1 %v3233_v10 }
 0x37e   :  { %v3122_v28 = vpop.eup %3121 }
 0x37f   :  { %v503_v30 = vmul.f32 %v3122_v28, %v3493_v44 }
 0x381   :  { %v504_v31 = vpack.c.bf16 %v503_v30, %v503_v30 }
 0x383   :  { %v723_v32 = vpop.xlane.xlu1 %722  ;;  %2872 = vmatmul.mubr.msk.bf16.vlgmr.msra.gmra.mrb[16].mxu1 %vm273_vm3, %v504_v31 }
 0x384   :  { %3125 = vrcp.f32 %v723_v32  ;;  %2882 = vmatpush3.bf16.msra.mxu1 %v3421_v29  ;;  %2883 = vmatprep.mubr.msk.bf16.mxu1 %vm3234_vm1, %v3233_v10 }
 0x385   :  { %2893 = vmatprep.subr.bf16.mxu1 %v3233_v10 }
 0x386   :  { %v3124_v26 = vpop.eup %3123 }
 0x387   :  { %v615_v33 = vmul.f32 %v3124_v26, %v3497_v49 }
 0x389   :  { %v616_v35 = vpack.c.bf16 %v615_v33, %v615_v33 }
 0x38b   :  { %2884 = vmatmul.mubr.msk.bf16.vlgmr.msra.gmra.mrb[20].mxu1 %vm273_vm3, %v616_v35  ;;  %v829_v36 = vpop.xlane.xlu0 %828  ;;  %v2686_v35 = vld [vmem:[%s4012_s7] ss:$0 sm:$0xff] }
 0x38c   :  { %2894 = vmatpush3.bf16.msra.mxu1 %v3385_v20  ;;  %3127 = vrcp.f32 %v829_v36  ;;  %2895 = vmatprep.mubr.msk.bf16.mxu1 %vm3234_vm1, %v3233_v10  ;;  %v2690_v36 = vld [vmem:[%s4014_s9] ss:$0 sm:$0xff] }
 0x38d   :  { %2905 = vmatprep.subr.bf16.mxu1 %v3233_v10 }
 0x38e   :  { %v3126_v29 = vpop.eup %3125 }
 0x38f   :  { %v725_v38 = vmul.f32 %v3126_v29, %v3501_v54 }
 0x391   :  { %v726_v39 = vpack.c.bf16 %v725_v38, %v725_v38 }
 0x393   :  { %v939_v41 = vpop.xlane.xlu1 %938  ;;  %2896 = vmatmul.mubr.msk.bf16.vlgmr.msra.gmra.mrb[24].mxu1 %vm273_vm3, %v726_v39 }
 0x394   :  { %3129 = vrcp.f32 %v939_v41  ;;  %2906 = vmatpush3.bf16.msra.mxu1 %v3441_v34  ;;  %2907 = vmatprep.mubr.msk.bf16.mxu1 %vm3234_vm1, %v3233_v10 }
 0x395   :  { %2917 = vmatprep.subr.bf16.mxu1 %v3233_v10 }
 0x396   :  { %v3128_v20 = vpop.eup %3127 }
 0x397   :  { %v831_v42 = vmul.f32 %v3128_v20, %v3505_v60 }
 0x399   :  { %v832_v43 = vpack.c.bf16 %v831_v42, %v831_v42 }
 0x39b   :  { %2908 = vmatmul.mubr.msk.bf16.vlgmr.msra.gmra.mrb[28].mxu1 %vm273_vm3, %v832_v43  ;;  %v1049_v44 = vpop.xlane.xlu0 %1048 }
 0x39c   :  { %2918 = vmatpush3.bf16.msra.mxu1 %v3452_v37  ;;  %3131 = vrcp.f32 %v1049_v44  ;;  %2919 = vmatprep.mubr.msk.bf16.mxu1 %vm3234_vm1, %v3233_v10 }
 0x39d   :  { %2929 = vmatprep.subr.bf16.mxu1 %v3233_v10 }
 0x39e   :  { %v3130_v34 = vpop.eup %3129 }
 0x39f   :  { %v941_v45 = vmul.f32 %v3130_v34, %v3509_v1 }
 0x3a1   :  { %v942_v46 = vpack.c.bf16 %v941_v45, %v941_v45 }
 0x3a3   :  { %2920 = vmatmul.mubr.msk.bf16.vlgmr.msra.gmra.mrb[32].mxu1 %vm273_vm3, %v942_v46 }
 0x3a4   :  { %2930 = vmatpush3.bf16.msra.mxu1 %v3463_v40  ;;  %2931 = vmatprep.mubr.msk.bf16.mxu1 %vm3234_vm1, %v3233_v10 }
 0x3a5   :  { %2943 = vmatprep.subr.bf16.mxu1 %v3233_v10 }
 0x3a6   :  { %v3132_v37 = vpop.eup %3131 }
 0x3a7   :  { %v1051_v47 = vmul.f32 %v3132_v37, %v3517_v6 }
 0x3a9   :  { %v1052_v48 = vpack.c.bf16 %v1051_v47, %v1051_v47 }
 0x3ab   :  { %2932 = vmatmul.mubr.msk.bf16.vlgmr.msra.gmra.mrb[36].mxu1 %vm273_vm3, %v1052_v48 }
 0x3ac   :  { %2947 = vmatprep.mubr.msk.bf16.mxu1 %vm3234_vm1, %v3233_v10  ;;  %2944 = vmatpush3.bf16.msra.mxu1 %v3090_v9 }
 0x3ad   :  { %2945 = vmatprep.subr.bf16.mxu1 %v3233_v10 }
 0x3b0   :  { %2946 = vmatpush3.bf16.msra.mxu1 %v3092_v12 }
 0x3b1   :  { %2957 = vmatprep.subr.bf16.mxu1 %v3233_v10 }
 0x3dd   :  { %v323_v49 = vpop.f32.mrb[8].mxu1 }
 0x3de   :  { %329 = vst.msk [vmem:[#allocation2] sm:$0xff] %vm226_vm2, %v323_v49  ;;  %v2849_v50 = vpop.f32.mrb[9].mxu1 }
 0x3df   :  { %v326_v51 = vpop.f32.mrb[10].mxu1 }
 0x3e0   :  { %v2850_v40 = vpop.f32.mrb[11].mxu1 }
 0x44e   :  { %v431_v52 = vpop.f32.mrb[12].mxu1 }
 0x44f   :  { %438 = vrot.lane.b32.xlu1 %v431_v52, %s3238_s5  ;;  %v2861_v53 = vpop.f32.mrb[13].mxu1 }
 0x450   :  { %v434_v54 = vpop.f32.mrb[14].mxu1 }
 0x451   :  { %v2862_v55 = vpop.f32.mrb[15].mxu1 }
 0x456   :  { %v543_v56 = vpop.f32.mrb[16].mxu1 }
 0x457   :  { %550 = vrot.lane.b32.xlu1 %v543_v56, %s3239_s2  ;;  %v2873_v57 = vpop.f32.mrb[17].mxu1 }
 0x458   :  { %v546_v58 = vpop.f32.mrb[18].mxu1 }
 0x459   :  { %v2874_v59 = vpop.f32.mrb[19].mxu1 }
 0x45e   :  { %v655_v60 = vpop.f32.mrb[20].mxu1 }
 0x45f   :  { %v2885_v61 = vpop.f32.mrb[21].mxu1 }
 0x460   :  { %v658_v62 = vpop.f32.mrb[22].mxu1 }
 0x461   :  { %v2886_v63 = vpop.f32.mrb[23].mxu1 }
 0x466   :  { %v764_v0 = vpop.f32.mrb[24].mxu1 }
 0x467   :  { %770 = vst.msk [vmem:[#allocation2 + $0x8] sm:$0xff] %vm226_vm2, %v764_v0  ;;  %v2897_v1 = vpop.f32.mrb[25].mxu1 }
 0x468   :  { %v767_v2 = vpop.f32.mrb[26].mxu1 }
 0x469   :  { %v2898_v3 = vpop.f32.mrb[27].mxu1 }
 0x46e   :  { %v871_v4 = vpop.f32.mrb[28].mxu1 }
 0x46f   :  { %878 = vrot.lane.b32.xlu0 %v871_v4, %s3238_s5  ;;  %v2909_v5 = vpop.f32.mrb[29].mxu1 }
 0x470   :  { %v874_v6 = vpop.f32.mrb[30].mxu1 }
 0x471   :  { %v2910_v7 = vpop.f32.mrb[31].mxu1 }
 0x473   :  { %662 = vrot.lane.b32.xlu0 %v655_v60, %s3240_s21 }
 0x476   :  { %v981_v13 = vpop.f32.mrb[32].mxu1 }
 0x477   :  { %988 = vrot.lane.b32.xlu1 %v981_v13, %s3239_s2  ;;  %v2921_v24 = vpop.f32.mrb[33].mxu1 }
 0x478   :  { %v984_v14 = vpop.f32.mrb[34].mxu1 }
 0x479   :  { %v2922_v15 = vpop.f32.mrb[35].mxu1 }
 0x47e   :  { %v1091_v16 = vpop.f32.mrb[36].mxu1 }
 0x47f   :  { %1098 = vrot.lane.b32.xlu1 %v1091_v16, %s3240_s21  ;;  %v2933_v19 = vpop.f32.mrb[37].mxu1 }
 0x480   :  { %v1094_v21 = vpop.f32.mrb[38].mxu1 }
 0x481   :  { %v2934_v22 = vpop.f32.mrb[39].mxu1 }
 0x483   :  { %1360 = vrot.lane.b32.xlu1 %v3527_v18, %s3236_s28 }
 0x487   :  { %1495 = vrot.lane.b32.xlu1 %v3527_v18, %s3237_s4 }
 0x48b   :  { %1628 = vrot.lane.b32.xlu1 %v3527_v18, %s3235_s27 }
 0x48f   :  { %1884 = vrot.lane.b32.xlu1 %v3525_v17, %s3236_s28 }
 0x493   :  { %2019 = vrot.lane.b32.xlu1 %v3525_v17, %s3237_s4 }
 0x497   :  { %2152 = vrot.lane.b32.xlu1 %v3525_v17, %s3235_s27 }
 0x4c1   :  { %v439_v23 = vpop.permute.xlu1 %438 }
 0x4c2   :  { %442 = vst.msk [vmem:[#allocation2] sm:$0xff] %vm441_vm4, %v439_v23 }
 0x4c9   :  { %v551_v25 = vpop.permute.xlu1 %550 }
 0x4ca   :  { %554 = vst.msk [vmem:[#allocation2] sm:$0xff] %vm553_vm5, %v551_v25 }
 0x4e1   :  { %v879_v27 = vpop.permute.xlu0 %878 }
 0x4e2   :  { %881 = vst.msk [vmem:[#allocation2 + $0x8] sm:$0xff] %vm441_vm4, %v879_v27 }
 0x4e5   :  { %v663_v28 = vpop.permute.xlu0 %662 }
 0x4e6   :  { %666 = vst.msk [vmem:[#allocation2] sm:$0xff] %vm665_vm6, %v663_v28 }
 0x4e9   :  { %v989_v30 = vpop.permute.xlu1 %988 }
 0x4ea   :  { %991 = vst.msk [vmem:[#allocation2 + $0x8] sm:$0xff] %vm553_vm5, %v989_v30 }
 0x4ed   :  { %v1102_v32 = vld [vmem:[#allocation2] sm:$0xff] }
 0x4f1   :  { %v1099_v31 = vpop.permute.xlu1 %1098 }
 0x4f2   :  { %1101 = vst.msk [vmem:[#allocation2 + $0x8] sm:$0xff] %vm665_vm6, %v1099_v31 }
 0x4f5   :  { %v1361_v54 = vpop.permute.xlu1 %1360 }
 0x4f9   :  { %v1103_v26 = vld [vmem:[#allocation2 + $0x8] sm:$0xff]  ;;  %v1496_v56 = vpop.permute.xlu1 %1495 }
 0x4fa   :  { %v1104_v33 = vpack.c.bf16 %v1103_v26, %v1102_v32 }
 0x4fc   :  { %2940 = vmatmul.mubr.msk.bf16.vlgmr.msra.gmra.mrb[32].mxu0 %vm96_vm0, %v1104_v33  ;;  %2948 = vmatmul.mubr.msk.bf16.vlgmr.msra.gmra.mrb[40].mxu1 %vm96_vm0, %v1104_v33 }
 0x4fd   :  { %2953 = vmatprep.mubr.msk.bf16.mxu0 %vm3234_vm1, %v3233_v10  ;;  %2959 = vmatprep.mubr.msk.bf16.mxu1 %vm3234_vm1, %v3233_v10  ;;  %v1629_v58 = vpop.permute.xlu1 %1628 }
 0x501   :  { %v1885_v63 = vpop.permute.xlu1 %1884 }
 0x5cf   :  { %v1165_v29 = vpop.f32.mrb[32].mxu0  ;;  %v1229_v38 = vpop.f32.mrb[40].mxu1 }
 0x5d0   :  { %v1166_v39 = vadd.f32 %v2686_v35, %v1165_v29  ;;  %v1230_v41 = vadd.f32 %v2690_v36, %v1229_v38  ;;  %v2941_v20 = vpop.f32.mrb[33].mxu0  ;;  %v2949_v42 = vpop.f32.mrb[41].mxu1 }
 0x5d1   :  { %v1168_v43 = vpop.f32.mrb[34].mxu0  ;;  %v1232_v44 = vpop.f32.mrb[42].mxu1 }
 0x5d2   :  { %v1237_v34 = vpack.c.bf16 %v1166_v39, %v1166_v39  ;;  %v3623_v45 = vpack.c.bf16 %v1230_v41, %v1230_v41  ;;  %v3625_v46 = vadd.f32 %v2690_v36, %v1232_v44  ;;  %v2942_v37 = vpop.f32.mrb[35].mxu0  ;;  %v2950_v47 = vpop.f32.mrb[43].mxu1  ;;  %v1169_v50 = vadd.f32 %v2686_v35, %v1168_v43 }
 0x5d4   :  { %1363 = vrot.lane.b32.xlu0 %v1237_v34, %s3236_s28  ;;  %v1243_v48 = vsel %vm226_vm2, %v1237_v34, 0  ;;  %v1314_v49 = vsel %vm1312_vm7, %v3623_v45, 0  ;;  %v1762_v51 = vpack.c.bf16 %v1169_v50, %v1169_v50 }
 0x5d5   :  { %2952 = vmatpush3.bf16.xpose.msra.mxu0 %v1243_v48  ;;  %2958 = vmatpush3.bf16.msra.mxu1 %v1314_v49 }
 0x5d6   :  { %2963 = vmatprep.subr.bf16.mxu0 %v3233_v10  ;;  %2969 = vmatprep.subr.bf16.mxu1 %v3233_v10  ;;  %v1768_v59 = vsel %vm226_vm2, %v1762_v51, 0 }
 0x5d8   :  { %1497 = vrot.lane.b32.xlu0 %v1237_v34, %s3237_s4 }
 0x5dc   :  { %1630 = vrot.lane.b32.xlu0 %v1237_v34, %s3235_s27  ;;  %2954 = vmatmul.mubr.msk.bf16.vlgmr.msra.gmra.mrb[36].mxu0 %vm226_vm2, %v3527_v18 }
 0x5dd   :  { %2965 = vmatprep.mubr.msk.bf16.mxu0 %vm3234_vm1, %v3233_v10 }
 0x5e0   :  { %1887 = vrot.lane.b32.xlu0 %v1762_v51, %s3236_s28 }
 0x5e4   :  { %2021 = vrot.lane.b32.xlu0 %v1762_v51, %s3237_s4 }
 0x5e8   :  { %2154 = vrot.lane.b32.xlu0 %v1762_v51, %s3235_s27 }
 0x646   :  { %v1364_v40 = vpop.permute.xlu0 %1363 }
 0x647   :  { %v1369_v52 = vsel %vm226_vm2, %v1364_v40, 0 }
 0x648   :  { %2964 = vmatpush3.bf16.xpose.msra.mxu0 %v1369_v52 }
 0x649   :  { %2975 = vmatprep.subr.bf16.mxu0 %v3233_v10 }
 0x64a   :  { %v1498_v53 = vpop.permute.xlu0 %1497 }
 0x64b   :  { %v1503_v18 = vsel %vm226_vm2, %v1498_v53, 0 }
 0x64e   :  { %v1631_v55 = vpop.permute.xlu0 %1630 }
 0x64f   :  { %2966 = vmatmul.mubr.msk.bf16.vlgmr.msra.gmra.mrb[40].mxu0 %vm226_vm2, %v1361_v54  ;;  %v1636_v57 = vsel %vm226_vm2, %v1631_v55, 0 }
 0x650   :  { %2976 = vmatpush3.bf16.xpose.msra.mxu0 %v1503_v18  ;;  %2977 = vmatprep.mubr.msk.bf16.mxu0 %vm3234_vm1, %v3233_v10 }
 0x651   :  { %2987 = vmatprep.subr.bf16.mxu0 %v3233_v10 }
 0x652   :  { %v1888_v60 = vpop.permute.xlu0 %1887 }
 0x653   :  { %v1893_v61 = vsel %vm226_vm2, %v1888_v60, 0 }
 0x656   :  { %v2022_v62 = vpop.permute.xlu0 %2021 }
 0x657   :  { %2978 = vmatmul.mubr.msk.bf16.vlgmr.msra.gmra.mrb[44].mxu0 %vm226_vm2, %v1496_v56  ;;  %v2027_v0 = vsel %vm226_vm2, %v2022_v62, 0 }
 0x658   :  { %2988 = vmatpush3.bf16.xpose.msra.mxu0 %v1636_v57  ;;  %2989 = vmatprep.mubr.msk.bf16.mxu0 %vm3234_vm1, %v3233_v10 }
 0x659   :  { %2999 = vmatprep.subr.bf16.mxu0 %v3233_v10 }
 0x65a   :  { %v2155_v1 = vpop.permute.xlu0 %2154 }
 0x65b   :  { %v2160_v2 = vsel %vm226_vm2, %v2155_v1, 0 }
 0x65f   :  { %2990 = vmatmul.mubr.msk.bf16.vlgmr.msra.gmra.mrb[48].mxu0 %vm226_vm2, %v1629_v58 }
 0x660   :  { %3000 = vmatpush3.bf16.xpose.msra.mxu0 %v1768_v59  ;;  %3001 = vmatprep.mubr.msk.bf16.mxu0 %vm3234_vm1, %v3233_v10 }
 0x661   :  { %3011 = vmatprep.subr.bf16.mxu0 %v3233_v10 }
 0x667   :  { %3002 = vmatmul.mubr.msk.bf16.vlgmr.msra.gmra.mrb[52].mxu0 %vm226_vm2, %v3525_v17  ;;  %v2020_v17 = vpop.permute.xlu1 %2019 }
 0x668   :  { %3012 = vmatpush3.bf16.xpose.msra.mxu0 %v1893_v61  ;;  %3013 = vmatprep.mubr.msk.bf16.mxu0 %vm3234_vm1, %v3233_v10 }
 0x669   :  { %3023 = vmatprep.subr.bf16.mxu0 %v3233_v10 }
 0x66b   :  { %v2153_v3 = vpop.permute.xlu1 %2152 }
 0x66f   :  { %3014 = vmatmul.mubr.msk.bf16.vlgmr.msra.gmra.mrb[56].mxu0 %vm226_vm2, %v1885_v63 }
 0x670   :  { %3024 = vmatpush3.bf16.xpose.msra.mxu0 %v2027_v0  ;;  %3025 = vmatprep.mubr.msk.bf16.mxu0 %vm3234_vm1, %v3233_v10 }
 0x671   :  { %3035 = vmatprep.subr.bf16.mxu0 %v3233_v10 }
 0x677   :  { %3026 = vmatmul.mubr.msk.bf16.vlgmr.msra.gmra.mrb[60].mxu0 %vm226_vm2, %v2020_v17 }
 0x678   :  { %3036 = vmatpush3.bf16.xpose.msra.mxu0 %v2160_v2  ;;  %3037 = vmatprep.mubr.msk.bf16.mxu0 %vm3234_vm1, %v3233_v10 }
 0x67f   :  { %3038 = vmatmul.mubr.msk.bf16.vlgmr.msra.gmra.mrb[64].mxu0 %vm226_vm2, %v2153_v3 }
 0x6af   :  { %v3675_v4 = vpop.f32.mrb[36].mxu0 }
 0x6b0   :  { %v2955_v5 = vpop.f32.mrb[37].mxu0  ;;  %v1286_v6 = vsel %vm226_vm2, %v3675_v4, -inf }
 0x6b1   :  { %1287 = vmax.xlane.f32.xlu0 %v1286_v6  ;;  %v1282_v7 = vpop.f32.mrb[38].mxu0 }
 0x6b2   :  { %v2956_v8 = vpop.f32.mrb[39].mxu0  ;;  %v1289_v9 = vsel %vm226_vm2, %v1282_v7, -inf }
 0x6b3   :  { %1290 = vmax.xlane.f32.xlu1 %v1289_v9 }
 0x722   :  { %v3680_v11 = vpop.f32.mrb[40].mxu0 }
 0x723   :  { %v2967_v12 = vpop.f32.mrb[41].mxu0  ;;  %v1412_v13 = vsel %vm226_vm2, %v3680_v11, -inf }
 0x724   :  { %1413 = vmax.xlane.f32.xlu0 %v1412_v13  ;;  %v3684_v24 = vpop.f32.mrb[42].mxu0 }
 0x725   :  { %v2968_v14 = vpop.f32.mrb[43].mxu0  ;;  %v1415_v15 = vsel %vm226_vm2, %v3684_v24, -inf }
 0x728   :  { %1416 = vmax.xlane.f32.xlu0 %v1415_v15 }
 0x72a   :  { %v3688_v16 = vpop.f32.mrb[44].mxu0 }
 0x72b   :  { %v2979_v19 = vpop.f32.mrb[45].mxu0  ;;  %v1546_v21 = vsel %vm226_vm2, %v3688_v16, -inf }
 0x72c   :  { %1547 = vmax.xlane.f32.xlu1 %v1546_v21  ;;  %v3692_v22 = vpop.f32.mrb[46].mxu0 }
 0x72d   :  { %v2980_v23 = vpop.f32.mrb[47].mxu0  ;;  %v1549_v25 = vsel %vm226_vm2, %v3692_v22, -inf }
 0x72e   :  { %1550 = vmax.xlane.f32.xlu0 %v1549_v25 }
 0x732   :  { %v3696_v27 = vpop.f32.mrb[48].mxu0 }
 0x733   :  { %v2991_v28 = vpop.f32.mrb[49].mxu0  ;;  %v1679_v30 = vsel %vm226_vm2, %v3696_v27, -inf }
 0x734   :  { %1680 = vmax.xlane.f32.xlu1 %v1679_v30  ;;  %v3700_v31 = vpop.f32.mrb[50].mxu0 }
 0x735   :  { %v2992_v32 = vpop.f32.mrb[51].mxu0  ;;  %v1682_v26 = vsel %vm226_vm2, %v3700_v31, -inf }
 0x736   :  { %1683 = vmax.xlane.f32.xlu0 %v1682_v26 }
 0x73a   :  { %v3704_v33 = vpop.f32.mrb[52].mxu0 }
 0x73b   :  { %v3003_v35 = vpop.f32.mrb[53].mxu0  ;;  %v1811_v60 = vsel %vm226_vm2, %v3704_v33, -inf }
 0x73c   :  { %v3706_v36 = vpop.f32.mrb[54].mxu0 }
 0x73d   :  { %v3004_v29 = vpop.f32.mrb[55].mxu0  ;;  %v1814_v38 = vsel %vm226_vm2, %v3706_v36, -inf }
 0x73e   :  { %1815 = vmax.xlane.f32.xlu0 %v1814_v38  ;;  %v1288_v57 = vpop.xlane.xlu0 %1287 }
 0x73f   :  { %v1292_v58 = vsub.f32 %v3675_v4, %v1288_v57 }
 0x740   :  { %v1291_v39 = vpop.xlane.xlu1 %1290 }
 0x741   :  { %v1293_v41 = vsub.f32 %v1282_v7, %v1291_v39  ;;  %v1294_v59 = vmul.f32 1.442695, %v1292_v58 }
 0x742   :  { %v3710_v20 = vpop.f32.mrb[56].mxu0 }
 0x743   :  { %v1296_v42 = vmul.f32 1.442695, %v1293_v41  ;;  %v3015_v43 = vpop.f32.mrb[57].mxu0  ;;  %v1936_v61 = vsel %vm226_vm2, %v3710_v20, -inf }
 0x744   :  { %v3712_v44 = vpop.f32.mrb[58].mxu0 }
 0x745   :  { %3133 = vpow2.f32 %v1296_v42  ;;  %1436 = vrot.lane.b32.xlu1 %v3623_v45, %s3236_s28  ;;  %v3016_v34 = vpop.f32.mrb[59].mxu0  ;;  %v1939_v37 = vsel %vm226_vm2, %v3712_v44, -inf }
 0x746   :  { %1940 = vmax.xlane.f32.xlu0 %v1939_v37  ;;  %3135 = vpow2.f32 %v1294_v59 }
 0x74a   :  { %v3718_v47 = vpop.f32.mrb[60].mxu0 }
 0x74b   :  { %v3027_v48 = vpop.f32.mrb[61].mxu0  ;;  %v2070_v62 = vsel %vm226_vm2, %v3718_v47, -inf }
 0x74c   :  { %v3720_v49 = vpop.f32.mrb[62].mxu0 }
 0x74d   :  { %v3028_v50 = vpop.f32.mrb[63].mxu0  ;;  %v2073_v51 = vsel %vm226_vm2, %v3720_v49, -inf }
 0x74e   :  { %2074 = vmax.xlane.f32.xlu0 %v2073_v51 }
 0x74f   :  { %v3724_v40 = vpop.eup %3133 }
 0x750   :  { %v1301_v52 = vsel %vm226_vm2, %v3724_v40, 0.0  ;;  %v3741_v63 = vpop.eup %3135 }
 0x751   :  { %v1298_v0 = vsel %vm226_vm2, %v3741_v63, 0.0 }
 0x752   :  { %1302 = vadd.xlane.f32.xlu0 %v1301_v52  ;;  %v3728_v53 = vpop.f32.mrb[64].mxu0 }
 0x753   :  { %v3039_v54 = vpop.f32.mrb[65].mxu0  ;;  %v2203_v1 = vsel %vm226_vm2, %v3728_v53, -inf }
 0x754   :  { %v3730_v18 = vpop.f32.mrb[66].mxu0 }
 0x755   :  { %v3040_v55 = vpop.f32.mrb[67].mxu0  ;;  %v2206_v56 = vsel %vm226_vm2, %v3730_v18, -inf }
 0x756   :  { %2207 = vmax.xlane.f32.xlu0 %v2206_v56 }
 0x769   :  { %1812 = vmax.xlane.f32.xlu1 %v1811_v60 }
 0x76d   :  { %1937 = vmax.xlane.f32.xlu1 %v1936_v61 }
 0x771   :  { %2071 = vmax.xlane.f32.xlu1 %v2070_v62 }
 0x775   :  { %1299 = vadd.xlane.f32.xlu1 %v1298_v0 }
 0x779   :  { %2204 = vmax.xlane.f32.xlu1 %v2203_v1 }
 0x7b1   :  { %v1414_v17 = vpop.xlane.xlu0 %1413 }
 0x7b2   :  { %v1418_v2 = vsub.f32 %v3680_v11, %v1414_v17 }
 0x7b4   :  { %v1420_v3 = vmul.f32 1.442695, %v1418_v2 }
 0x7b5   :  { %v1417_v4 = vpop.xlane.xlu0 %1416 }
 0x7b6   :  { %3137 = vpow2.f32 %v1420_v3  ;;  %v1419_v5 = vsub.f32 %v3684_v24, %v1417_v4 }
 0x7b8   :  { %v1422_v6 = vmul.f32 1.442695, %v1419_v5 }
 0x7b9   :  { %v1548_v11 = vpop.xlane.xlu1 %1547 }
 0x7ba   :  { %3139 = vpow2.f32 %v1422_v6  ;;  %v1552_v13 = vsub.f32 %v3688_v16, %v1548_v11 }
 0x7bb   :  { %v1551_v24 = vpop.xlane.xlu0 %1550 }
 0x7bc   :  { %v1553_v15 = vsub.f32 %v3692_v22, %v1551_v24  ;;  %v1554_v19 = vmul.f32 1.442695, %v1552_v13 }
 0x7be   :  { %v1556_v25 = vmul.f32 1.442695, %v1553_v15  ;;  %3141 = vpow2.f32 %v1554_v19 }
 0x7c0   :  { %v3749_v7 = vpop.eup %3137  ;;  %3143 = vpow2.f32 %v1556_v25 }
 0x7c1   :  { %v1424_v8 = vsel %vm226_vm2, %v3749_v7, 0.0  ;;  %v1681_v14 = vpop.xlane.xlu1 %1680 }
 0x7c2   :  { %1425 = vadd.xlane.f32.xlu1 %v1424_v8  ;;  %v1685_v21 = vsub.f32 %v3696_v27, %v1681_v14 }
 0x7c3   :  { %v1684_v23 = vpop.xlane.xlu0 %1683 }
 0x7c4   :  { %v3753_v9 = vpop.eup %3139  ;;  %v1687_v28 = vmul.f32 1.442695, %v1685_v21  ;;  %v1686_v30 = vsub.f32 %v3700_v31, %v1684_v23 }
 0x7c5   :  { %v1427_v12 = vsel %vm226_vm2, %v3753_v9, 0.0  ;;  %v1437_v35 = vpop.permute.xlu1 %1436 }
 0x7c6   :  { %1428 = vadd.xlane.f32.xlu0 %v1427_v12  ;;  %3145 = vpow2.f32 %v1687_v28  ;;  %v1442_v14 = vsel %vm1312_vm7, %v1437_v35, 0 }
 0x7c8   :  { %v3766_v22 = vpop.eup %3141 }
 0x7c9   :  { %v1558_v31 = vsel %vm226_vm2, %v3766_v22, 0.0 }
 0x7ca   :  { %v3768_v27 = vpop.eup %3143 }
 0x7cb   :  { %v1816_v32 = vpop.xlane.xlu0 %1815  ;;  %v1561_v48 = vsel %vm226_vm2, %v3768_v27, 0.0 }
 0x7cc   :  { %v1818_v26 = vsub.f32 %v3706_v36, %v1816_v32 }
 0x7ce   :  { %v1821_v16 = vmul.f32 1.442695, %v1818_v26 }
 0x7d0   :  { %v3772_v41 = vpop.eup %3145 }
 0x7d1   :  { %v1691_v37 = vsel %vm226_vm2, %v3772_v41, 0.0 }
 0x7d3   :  { %1702 = vrot.lane.b32.xlu1 %v3623_v45, %s3235_s27  ;;  %v1941_v29 = vpop.xlane.xlu0 %1940 }
 0x7d4   :  { %v1943_v36 = vsub.f32 %v3712_v44, %v1941_v29 }
 0x7db   :  { %v2075_v38 = vpop.xlane.xlu0 %2074 }
 0x7dc   :  { %1569 = vrot.lane.b32.xlu0 %v3623_v45, %s3237_s4  ;;  %v1689_v45 = vmul.f32 1.442695, %v1686_v30  ;;  %v2077_v54 = vsub.f32 %v3720_v49, %v2075_v38 }
 0x7de   :  { %3147 = vpow2.f32 %v1689_v45  ;;  %v2080_v58 = vmul.f32 1.442695, %v2077_v54 }
 0x7df   :  { %3149 = vpow2.f32 %v1821_v16  ;;  %v1303_v52 = vpop.xlane.xlu0 %1302 }
 0x7e3   :  { %v2208_v59 = vpop.xlane.xlu0 %2207 }
 0x7e4   :  { %v2210_v61 = vsub.f32 %v3730_v18, %v2208_v59 }
 0x7e6   :  { %v2213_v2 = vmul.f32 1.442695, %v2210_v61 }
 0x7e8   :  { %v3780_v50 = vpop.eup %3147 }
 0x7e9   :  { %v1694_v56 = vsel %vm226_vm2, %v3780_v50, 0.0  ;;  %v3786_v57 = vpop.eup %3149 }
 0x7ea   :  { %v1826_v60 = vsel %vm226_vm2, %v3786_v57, 0.0 }
 0x7f6   :  { %v1813_v39 = vpop.xlane.xlu1 %1812 }
 0x7f7   :  { %v1817_v42 = vsub.f32 %v3704_v33, %v1813_v39  ;;  %1559 = vadd.xlane.f32.xlu1 %v1558_v31  ;;  %v1946_v33 = vmul.f32 1.442695, %v1943_v36 }
 0x7f9   :  { %v1819_v43 = vmul.f32 1.442695, %v1817_v42 }
 0x7fa   :  { %v1938_v34 = vpop.xlane.xlu1 %1937 }
 0x7fb   :  { %3151 = vpow2.f32 %v1819_v43  ;;  %v1942_v51 = vsub.f32 %v3710_v20, %v1938_v34  ;;  %1692 = vadd.xlane.f32.xlu1 %v1691_v37  ;;  %1562 = vadd.xlane.f32.xlu0 %v1561_v48 }
 0x7fd   :  { %v1944_v44 = vmul.f32 1.442695, %v1942_v51 }
 0x7fe   :  { %v2072_v55 = vpop.xlane.xlu1 %2071 }
 0x7ff   :  { %3153 = vpow2.f32 %v1944_v44  ;;  %1695 = vadd.xlane.f32.xlu0 %v1694_v56  ;;  %v2076_v23 = vsub.f32 %v3718_v47, %v2072_v55 }
 0x800   :  { %3155 = vpow2.f32 %v1946_v33 }
 0x801   :  { %3157 = vrcp.f32 %v1303_v52  ;;  %v2078_v25 = vmul.f32 1.442695, %v2076_v23 }
 0x802   :  { %v1300_v20 = vpop.xlane.xlu1 %1299 }
 0x803   :  { %1827 = vadd.xlane.f32.xlu0 %v1826_v60  ;;  %3159 = vrcp.f32 %v1300_v20 }
 0x804   :  { %3161 = vpow2.f32 %v2080_v58 }
 0x805   :  { %v3790_v49 = vpop.eup %3151 }
 0x806   :  { %v2205_v62 = vpop.xlane.xlu1 %2204  ;;  %v1823_v0 = vsel %vm226_vm2, %v3790_v49, 0.0 }
 0x807   :  { %v2209_v1 = vsub.f32 %v3728_v53, %v2205_v62  ;;  %1824 = vadd.xlane.f32.xlu1 %v1823_v0 }
 0x809   :  { %v3796_v17 = vpop.eup %3153  ;;  %v2211_v3 = vmul.f32 1.442695, %v2209_v1 }
 0x80a   :  { %v1948_v4 = vsel %vm226_vm2, %v3796_v17, 0.0  ;;  %v3800_v5 = vpop.eup %3155 }
 0x80b   :  { %3163 = vpow2.f32 %v2211_v3  ;;  %1949 = vadd.xlane.f32.xlu0 %v1948_v4  ;;  %v3158_v6 = vpop.eup %3157  ;;  %v1951_v8 = vsel %vm226_vm2, %v3800_v5, 0.0 }
 0x80c   :  { %3165 = vpow2.f32 %v2213_v2  ;;  %v1307_v53 = vmul.f32 %v3158_v6, %v3724_v40  ;;  %v3819_v40 = vpack.c.bf16 %v3625_v46, %v3625_v46 }
 0x80d   :  { %v3160_v18 = vpop.eup %3159  ;;  %3167 = vpow2.f32 %v2078_v25 }
 0x80e   :  { %v3804_v12 = vpop.eup %3161  ;;  %v1306_v11 = vmul.f32 %v3160_v18, %v3741_v63  ;;  %v1838_v60 = vsel %vm1312_vm7, %v3819_v40, 0 }
 0x80f   :  { %1952 = vadd.xlane.f32.xlu0 %v1951_v8  ;;  %v2085_v24 = vsel %vm226_vm2, %v3804_v12, 0.0 }
 0x810   :  { %v1308_v13 = vpack.c.bf16 %v1307_v53, %v1306_v11 }
 0x812   :  { %2960 = vmatmul.mubr.msk.bf16.vlgmr.msra.gmra.mrb[44].mxu1 %vm226_vm2, %v1308_v13 }
 0x813   :  { %2086 = vadd.xlane.f32.xlu0 %v2085_v24  ;;  %2970 = vmatpush3.bf16.msra.mxu1 %v1442_v14 }
 0x814   :  { %2971 = vmatprep.mubr.msk.bf16.mxu1 %vm3234_vm1, %v3233_v10  ;;  %2981 = vmatprep.subr.bf16.mxu1 %v3233_v10 }
 0x815   :  { %v3814_v15 = vpop.eup %3163 }
 0x816   :  { %v2215_v63 = vsel %vm226_vm2, %v3814_v15, 0.0  ;;  %v3823_v19 = vpop.eup %3165 }
 0x817   :  { %2216 = vadd.xlane.f32.xlu0 %v2215_v63  ;;  %v2218_v21 = vsel %vm226_vm2, %v3823_v19, 0.0  ;;  %v3832_v46 = vpop.eup %3167 }
 0x818   :  { %1960 = vrot.lane.b32.xlu1 %v3819_v40, %s3236_s28  ;;  %v2082_v28 = vsel %vm226_vm2, %v3832_v46, 0.0 }
 0x81b   :  { %2219 = vadd.xlane.f32.xlu0 %v2218_v21 }
 0x831   :  { %2093 = vrot.lane.b32.xlu0 %v3819_v40, %s3237_s4 }
 0x83c   :  { %2083 = vadd.xlane.f32.xlu1 %v2082_v28 }
 0x84d   :  { %2226 = vrot.lane.b32.xlu1 %v3819_v40, %s3235_s27 }
 0x84f   :  { %v1426_v30 = vpop.xlane.xlu1 %1425 }
 0x850   :  { %3169 = vrcp.f32 %v1426_v30 }
 0x853   :  { %v1429_v32 = vpop.xlane.xlu0 %1428  ;;  %v1703_v39 = vpop.permute.xlu1 %1702 }
 0x854   :  { %3171 = vrcp.f32 %v1429_v32  ;;  %v1708_v44 = vsel %vm1312_vm7, %v1703_v39, 0 }
 0x857   :  { %v1570_v35 = vpop.permute.xlu0 %1569 }
 0x858   :  { %v1575_v38 = vsel %vm1312_vm7, %v1570_v35, 0 }
 0x85a   :  { %v3170_v45 = vpop.eup %3169 }
 0x85b   :  { %v1432_v26 = vmul.f32 %v3170_v45, %v3749_v7 }
 0x85e   :  { %v3172_v47 = vpop.eup %3171 }
 0x85f   :  { %v1433_v16 = vmul.f32 %v3172_v47, %v3753_v9 }
 0x861   :  { %v1434_v29 = vpack.c.bf16 %v1433_v16, %v1432_v26 }
 0x863   :  { %2972 = vmatmul.mubr.msk.bf16.vlgmr.msra.gmra.mrb[48].mxu1 %vm226_vm2, %v1434_v29 }
 0x864   :  { %2982 = vmatpush3.bf16.msra.mxu1 %v1575_v38  ;;  %2983 = vmatprep.mubr.msk.bf16.mxu1 %vm3234_vm1, %v3233_v10 }
 0x865   :  { %2993 = vmatprep.subr.bf16.mxu1 %v3233_v10 }
 0x884   :  { %v1560_v31 = vpop.xlane.xlu1 %1559 }
 0x885   :  { %3173 = vrcp.f32 %v1560_v31 }
 0x888   :  { %v1563_v42 = vpop.xlane.xlu0 %1562  ;;  %v1693_v36 = vpop.xlane.xlu1 %1692 }
 0x889   :  { %3175 = vrcp.f32 %v1563_v42 }
 0x88c   :  { %v1696_v7 = vpop.xlane.xlu0 %1695 }
 0x88d   :  { %3177 = vrcp.f32 %v1696_v7 }
 0x88e   :  { %3179 = vrcp.f32 %v1693_v36 }
 0x88f   :  { %v3174_v9 = vpop.eup %3173 }
 0x890   :  { %v1828_v34 = vpop.xlane.xlu0 %1827  ;;  %v1566_v48 = vmul.f32 %v3174_v9, %v3766_v22 }
 0x893   :  { %v3176_v43 = vpop.eup %3175 }
 0x894   :  { %v1825_v37 = vpop.xlane.xlu1 %1824  ;;  %v1567_v51 = vmul.f32 %v3176_v43, %v3768_v27 }
 0x895   :  { %3181 = vrcp.f32 %v1825_v37 }
 0x896   :  { %v1568_v52 = vpack.c.bf16 %v1567_v51, %v1566_v48  ;;  %3183 = vrcp.f32 %v1828_v34 }
 0x897   :  { %v3178_v33 = vpop.eup %3177 }
 0x898   :  { %v1950_v54 = vpop.xlane.xlu0 %1949  ;;  %2984 = vmatmul.mubr.msk.bf16.vlgmr.msra.gmra.mrb[52].mxu1 %vm226_vm2, %v1568_v52  ;;  %v3180_v55 = vpop.eup %3179  ;;  %v1700_v56 = vmul.f32 %v3178_v33, %v3780_v50  ;;  %v3093_v33 = vld [vmem:[%s4015_s10] sm:$0xff]  }
 0x899   :  { %2994 = vmatpush3.bf16.msra.mxu1 %v1708_v44  ;;  %2995 = vmatprep.mubr.msk.bf16.mxu1 %vm3234_vm1, %v3233_v10  ;;  %v1699_v27 = vmul.f32 %v3180_v55, %v3772_v41  ;;  %v1961_v0 = vpop.permute.xlu1 %1960 }
 0x89a   :  { %3005 = vmatprep.subr.bf16.mxu1 %v3233_v10  ;;  %v1966_v4 = vsel %vm1312_vm7, %v1961_v0, 0  ;;  %3047 = vmatprep.subr.bf16.mxu0 %v3093_v33 }
 0x89b   :  { %v1701_v58 = vpack.c.bf16 %v1700_v56, %v1699_v27  ;;  %3048 = vmatpush3.bf16.msra.mxu0 %v3093_v33 }
 0x89c   :  { %v1953_v22 = vpop.xlane.xlu0 %1952 }
 0x89d   :  { %3185 = vrcp.f32 %v1953_v22 }
 0x89e   :  { %3187 = vrcp.f32 %v1950_v54  ;;  %v3094_v54 = vld [vmem:[%s4015_s10 + $0x8] sm:$0xff]  }
 0x89f   :  { %v3182_v59 = vpop.eup %3181  ;;  %3049 = vmatprep.subr.bf16.mxu0 %v3094_v54 }
 0x8a0   :  { %v2087_v20 = vpop.xlane.xlu0 %2086  ;;  %2996 = vmatmul.mubr.msk.bf16.vlgmr.msra.gmra.mrb[56].mxu1 %vm226_vm2, %v1701_v58  ;;  %v3184_v61 = vpop.eup %3183  ;;  %v1831_v50 = vmul.f32 %v3182_v59, %v3790_v49  ;;  %3050 = vmatpush3.bf16.msra.mxu0 %v3094_v54 }
 0x8a1   :  { %3006 = vmatpush3.bf16.msra.mxu1 %v1838_v60  ;;  %3007 = vmatprep.mubr.msk.bf16.mxu1 %vm3234_vm1, %v3233_v10  ;;  %v1832_v62 = vmul.f32 %v3184_v61, %v3786_v57  ;;  %3189 = vrcp.f32 %v2087_v20 }
 0x8a2   :  { %3017 = vmatprep.subr.bf16.mxu1 %v3233_v10 }
 0x8a3   :  { %v1833_v1 = vpack.c.bf16 %v1832_v62, %v1831_v50 }
 0x8a4   :  { %v2217_v41 = vpop.xlane.xlu0 %2216 }
 0x8a7   :  { %v3186_v2 = vpop.eup %3185 }
 0x8a8   :  { %v2220_v3 = vpop.xlane.xlu0 %2219  ;;  %3008 = vmatmul.mubr.msk.bf16.vlgmr.msra.gmra.mrb[60].mxu1 %vm226_vm2, %v1833_v1  ;;  %v3188_v6 = vpop.eup %3187  ;;  %v1957_v49 = vmul.f32 %v3186_v2, %v3800_v5 }
 0x8a9   :  { %3018 = vmatpush3.bf16.msra.mxu1 %v1966_v4  ;;  %3019 = vmatprep.mubr.msk.bf16.mxu1 %vm3234_vm1, %v3233_v10  ;;  %v1956_v18 = vmul.f32 %v3188_v6, %v3796_v17 }
 0x8aa   :  { %3029 = vmatprep.subr.bf16.mxu1 %v3233_v10 }
 0x8ab   :  { %v1958_v8 = vpack.c.bf16 %v1957_v49, %v1956_v18  ;;  %v3190_v5 = vpop.eup %3189 }
 0x8ac   :  { %v2094_v57 = vpop.permute.xlu0 %2093  ;;  %v2091_v17 = vmul.f32 %v3190_v5, %v3804_v12  ;;  %v3095_v5 = vld [vmem:[%s4019_s14] sm:$0xff]  }
 0x8ad   :  { %v2099_v53 = vsel %vm1312_vm7, %v2094_v57, 0 }
 0x8b0   :  { %3020 = vmatmul.mubr.msk.bf16.vlgmr.msra.gmra.mrb[64].mxu1 %vm226_vm2, %v1958_v8 }
 0x8b1   :  { %3030 = vmatpush3.bf16.msra.mxu1 %v2099_v53  ;;  %3031 = vmatprep.mubr.msk.bf16.mxu1 %vm3234_vm1, %v3233_v10 }
 0x8b2   :  { %3041 = vmatprep.subr.bf16.mxu1 %v3233_v10 }
 0x8c9   :  { %v2084_v11 = vpop.xlane.xlu1 %2083 }
 0x8ca   :  { %3191 = vrcp.f32 %v2084_v11 }
 0x8cb   :  { %3193 = vrcp.f32 %v2220_v3 }
 0x8cc   :  { %3195 = vrcp.f32 %v2217_v41 }
 0x8cd   :  { %v2227_v14 = vpop.permute.xlu1 %2226 }
 0x8ce   :  { %v2232_v21 = vsel %vm1312_vm7, %v2227_v14, 0 }
 0x8d4   :  { %v3192_v13 = vpop.eup %3191 }
 0x8d5   :  { %v2090_v24 = vmul.f32 %v3192_v13, %v3832_v46  ;;  %v3194_v63 = vpop.eup %3193  ;;  %v3096_v13 = vld [vmem:[%s4019_s14 + $0x8] sm:$0xff]  }
 0x8d6   :  { %v3196_v23 = vpop.eup %3195  ;;  %v2224_v25 = vmul.f32 %v3194_v63, %v3823_v19 }
 0x8d7   :  { %v2092_v40 = vpack.c.bf16 %v2091_v17, %v2090_v24  ;;  %v2223_v28 = vmul.f32 %v3196_v23, %v3814_v15  ;;  %v2710_v17 = vld [vmem:[%s4016_s11] ss:$0 sm:$0xff]  ;;  %v3205_v23 = vld [vmem:[%s4036_s26 + $0x10] sm:$0xff] }
 0x8d9   :  { %3032 = vmatmul.mubr.msk.bf16.vlgmr.msra.gmra.mrb[68].mxu1 %vm226_vm2, %v2092_v40  ;;  %v2225_v30 = vpack.c.bf16 %v2224_v25, %v2223_v28  ;;  %v2715_v28 = vld [vmem:[%s4017_s12] ss:$0 sm:$0xff] }
 0x8da   :  { %3042 = vmatpush3.bf16.msra.mxu1 %v2232_v21  ;;  %3043 = vmatprep.mubr.msk.bf16.mxu1 %vm3234_vm1, %v3233_v10 }
 0x8db   :  { %3055 = vmatprep.subr.bf16.mxu1 %v3095_v5 }
 0x8e1   :  { %3044 = vmatmul.mubr.msk.bf16.vlgmr.msra.gmra.mrb[72].mxu1 %vm226_vm2, %v2225_v30 }
 0x8e2   :  { %3056 = vmatpush3.bf16.msra.mxu1 %v3095_v5 }
 0x8e3   :  { %3057 = vmatprep.subr.bf16.mxu1 %v3096_v13 }
 0x8e5   :  { %v1350_v12 = vpop.f32.mrb[44].mxu1 }
 0x8e6   :  { %1357 = vst.msk [vmem:[#allocation3] sm:$0xff] %vm226_vm2, %v1350_v12  ;;  %v2961_v46 = vpop.f32.mrb[45].mxu1  ;;  %3058 = vmatpush3.bf16.msra.mxu1 %v3096_v13 }
 0x8e7   :  { %v1353_v32 = vpop.f32.mrb[46].mxu1  ;;  %v3206_v46 = vld [vmem:[%s4036_s26] sm:$0xff] }
 0x8e8   :  { %1358 = vst.msk [vmem:[#allocation3 + $0x8] sm:$0xff] %vm226_vm2, %v1353_v32  ;;  %v2962_v45 = vpop.f32.mrb[47].mxu1 }
 0x936   :  { %v1478_v47 = vpop.f32.mrb[48].mxu1 }
 0x937   :  { %1487 = vrot.lane.b32.xlu1 %v1478_v47, %s3238_s5  ;;  %v2973_v26 = vpop.f32.mrb[49].mxu1  ;;  %v3207_v47 = vld [vmem:[%s4036_s26 + $0x18] sm:$0xff] }
 0x938   :  { %v1481_v10 = vpop.f32.mrb[50].mxu1 }
 0x939   :  { %v2974_v16 = vpop.f32.mrb[51].mxu1 }
 0x93a   :  { %v3208_v16 = vld [vmem:[%s4036_s26 + $0x8] sm:$0xff] }
 0x93b   :  { %1489 = vrot.lane.b32.xlu1 %v1481_v10, %s3238_s5 }
 0x96b   :  { %v1611_v15 = vpop.f32.mrb[52].mxu1 }
 0x96c   :  { %1620 = vrot.lane.b32.xlu1 %v1611_v15, %s3239_s2  ;;  %v2985_v19 = vpop.f32.mrb[53].mxu1 }
 0x96d   :  { %v1614_v35 = vpop.f32.mrb[54].mxu1 }
 0x96e   :  { %v2986_v29 = vpop.f32.mrb[55].mxu1 }
 0x970   :  { %1622 = vrot.lane.b32.xlu1 %v1614_v35, %s3239_s2  ;;  %v2716_v35 = vld [vmem:[%s4018_s13] ss:$0 sm:$0xff] }
 0x973   :  { %v1744_v38 = vpop.f32.mrb[56].mxu1 }
 0x974   :  { %1753 = vrot.lane.b32.xlu0 %v1744_v38, %s3240_s21  ;;  %v2997_v39 = vpop.f32.mrb[57].mxu1 }
 0x975   :  { %v1747_v31 = vpop.f32.mrb[58].mxu1 }
 0x976   :  { %1755 = vrot.lane.b32.xlu1 %v1747_v31, %s3240_s21  ;;  %v2998_v42 = vpop.f32.mrb[59].mxu1 }
 0x97b   :  { %v1874_v7 = vpop.f32.mrb[60].mxu1 }
 0x97c   :  { %1881 = vst.msk [vmem:[#allocation3 + $0x10] sm:$0xff] %vm226_vm2, %v1874_v7  ;;  %v3009_v36 = vpop.f32.mrb[61].mxu1 }
 0x97d   :  { %v1877_v9 = vpop.f32.mrb[62].mxu1 }
 0x97e   :  { %1882 = vst.msk [vmem:[#allocation3 + $0x18] sm:$0xff] %vm226_vm2, %v1877_v9  ;;  %v3010_v43 = vpop.f32.mrb[63].mxu1 }
 0x97f   :  { %v3097_v43 = vld [vmem:[%s4021_s16] sm:$0xff]  }
 0x980   :  { %3063 = vmatprep.subr.bf16.mxu0 %v3097_v43 }
 0x983   :  { %v2002_v34 = vpop.f32.mrb[64].mxu1 }
 0x984   :  { %2011 = vrot.lane.b32.xlu0 %v2002_v34, %s3238_s5  ;;  %v3021_v37 = vpop.f32.mrb[65].mxu1  ;;  %v3098_v34 = vld [vmem:[%s4021_s16 + $0x8] sm:$0xff]  }
 0x985   :  { %v2005_v48 = vpop.f32.mrb[66].mxu1  ;;  %v3099_v37 = vld [vmem:[%s4021_s16 + $0x10] sm:$0xff]  }
 0x986   :  { %2013 = vrot.lane.b32.xlu1 %v2005_v48, %s3238_s5  ;;  %v3022_v51 = vpop.f32.mrb[67].mxu1  ;;  %v3100_v48 = vld [vmem:[%s4021_s16 + $0x18] sm:$0xff]  }
 0x987   :  { %v2717_v51 = vld [vmem:[%s4020_s15] ss:$0 sm:$0xff] }
 0x9a9   :  { %v1488_v52 = vpop.permute.xlu1 %1487 }
 0x9aa   :  { %1493 = vst.msk [vmem:[#allocation3] sm:$0xff] %vm441_vm4, %v1488_v52 }
 0x9ac   :  { %v2135_v44 = vpop.f32.mrb[68].mxu1 }
 0x9ad   :  { %v1490_v55 = vpop.permute.xlu1 %1489  ;;  %2144 = vrot.lane.b32.xlu0 %v2135_v44, %s3239_s2  ;;  %v3033_v56 = vpop.f32.mrb[69].mxu1 }
 0x9ae   :  { %1494 = vst.msk [vmem:[#allocation3 + $0x8] sm:$0xff] %vm441_vm4, %v1490_v55  ;;  %v2138_v22 = vpop.f32.mrb[70].mxu1 }
 0x9af   :  { %2146 = vrot.lane.b32.xlu1 %v2138_v22, %s3239_s2  ;;  %v3034_v27 = vpop.f32.mrb[71].mxu1 }
 0x9b4   :  { %v2268_v58 = vpop.f32.mrb[72].mxu1 }
 0x9b5   :  { %2277 = vrot.lane.b32.xlu0 %v2268_v58, %s3240_s21  ;;  %v3045_v59 = vpop.f32.mrb[73].mxu1 }
 0x9b6   :  { %v2271_v20 = vpop.f32.mrb[74].mxu1 }
 0x9b7   :  { %2279 = vrot.lane.b32.xlu1 %v2271_v20, %s3240_s21  ;;  %v3046_v60 = vpop.f32.mrb[75].mxu1 }
 0x9de   :  { %v1621_v61 = vpop.permute.xlu1 %1620 }
 0x9df   :  { %1626 = vst.msk [vmem:[#allocation3] sm:$0xff] %vm553_vm5, %v1621_v61 }
 0x9e2   :  { %v1623_v50 = vpop.permute.xlu1 %1622 }
 0x9e3   :  { %1627 = vst.msk [vmem:[#allocation3 + $0x8] sm:$0xff] %vm553_vm5, %v1623_v50 }
 0x9e6   :  { %v1754_v41 = vpop.permute.xlu0 %1753 }
 0x9e7   :  { %1759 = vst.msk [vmem:[#allocation3] sm:$0xff] %vm665_vm6, %v1754_v41 }
 0x9e8   :  { %v1756_v62 = vpop.permute.xlu1 %1755 }
 0x9e9   :  { %1760 = vst.msk [vmem:[#allocation3 + $0x8] sm:$0xff] %vm665_vm6, %v1756_v62 }
 0x9ee   :  { %v2285_v0 = vld [vmem:[#allocation3] sm:$0xff] }
 0x9f0   :  { %v2286_v1 = vld [vmem:[#allocation3 + $0x8] sm:$0xff] }
 0x9f1   :  { %v2289_v2 = vpack.c.bf16 %v2286_v1, %v2285_v0 }
 0x9f3   :  { %3051 = vmatprep.mubr.msk.bf16.mxu0 %vm96_vm0, %v2289_v2 }
 0x9f6   :  { %v2012_v3 = vpop.permute.xlu0 %2011 }
 0x9f7   :  { %2017 = vst.msk [vmem:[#allocation3 + $0x10] sm:$0xff] %vm441_vm4, %v2012_v3 }
 0x9f8   :  { %v2014_v4 = vpop.permute.xlu1 %2013 }
 0x9f9   :  { %2018 = vst.msk [vmem:[#allocation3 + $0x18] sm:$0xff] %vm441_vm4, %v2014_v4 }
 0xa1f   :  { %v2145_v6 = vpop.permute.xlu0 %2144 }
 0xa20   :  { %2150 = vst.msk [vmem:[#allocation3 + $0x10] sm:$0xff] %vm553_vm5, %v2145_v6 }
 0xa21   :  { %v2147_v49 = vpop.permute.xlu1 %2146 }
 0xa22   :  { %2151 = vst.msk [vmem:[#allocation3 + $0x18] sm:$0xff] %vm553_vm5, %v2147_v49 }
 0xa27   :  { %v2278_v18 = vpop.permute.xlu0 %2277 }
 0xa28   :  { %2283 = vst.msk [vmem:[#allocation3 + $0x10] sm:$0xff] %vm665_vm6, %v2278_v18 }
 0xa29   :  { %v2280_v57 = vpop.permute.xlu1 %2279 }
 0xa2a   :  { %2284 = vst.msk [vmem:[#allocation3 + $0x18] sm:$0xff] %vm665_vm6, %v2280_v57 }
 0xa2f   :  { %v2287_v8 = vld [vmem:[#allocation3 + $0x10] sm:$0xff] }
 0xa31   :  { %v2288_v53 = vld [vmem:[#allocation3 + $0x18] sm:$0xff] }
 0xa32   :  { %v2290_v11 = vpack.c.bf16 %v2288_v53, %v2287_v8 }
 0xa34   :  { %3052 = vmatmul.mubr.msk.bf16.vlgmr.msra.gmra.mrb[68].mxu0 %vm96_vm0, %v2290_v11 }
 0xa35   :  { %3064 = vmatpush3.bf16.msra.mxu0 %v3097_v43 }
 0xa36   :  { %3065 = vmatprep.subr.bf16.mxu0 %v3098_v34 }
 0xa39   :  { %3066 = vmatpush3.bf16.msra.mxu0 %v3098_v34  ;;  %v2730_v34 = vld [vmem:[%s4024_s19] ss:$0 sm:$0xff] }
 0xa3a   :  { %3067 = vmatprep.subr.bf16.mxu0 %v3099_v37 }
 0xa3d   :  { %3068 = vmatpush3.bf16.msra.mxu0 %v3099_v37 }
 0xa3e   :  { %3069 = vmatprep.subr.bf16.mxu0 %v3100_v48 }
 0xa41   :  { %3070 = vmatpush3.bf16.msra.mxu0 %v3100_v48 }
 0xb07   :  { %v3053_v24 = vpop.f32.mrb[68].mxu0 }
 0xb08   :  { %v2363_v14 = vadd.f32 %v3053_v24, %v2710_v17  ;;  %v2354_v40 = vpop.f32.mrb[69].mxu0 }
 0xb09   :  { %v2355_v63 = vadd.f32 %v2710_v17, %v2354_v40  ;;  %v3054_v21 = vpop.f32.mrb[70].mxu0 }
 0xb0a   :  { %v2371_v25 = vadd.f32 %v3205_v23, %v2363_v14  ;;  %v2366_v30 = vadd.f32 %v3054_v21, %v2710_v17  ;;  %v2357_v12 = vpop.f32.mrb[71].mxu0 }
 0xb0b   :  { %v2369_v32 = vadd.f32 %v3206_v46, %v2355_v63  ;;  %v2358_v45 = vadd.f32 %v2710_v17, %v2357_v12 }
 0xb0c   :  { %v2372_v26 = vadd.f32 %v3207_v47, %v2366_v30  ;;  %v2382_v19 = vmul.f32 %v2715_v28, %v2371_v25 }
 0xb0d   :  { %v2380_v10 = vmul.f32 %v2715_v28, %v2369_v32  ;;  %v2370_v15 = vadd.f32 %v3208_v16, %v2358_v45 }
 0xb0e   :  { %v2383_v29 = vmul.f32 %v2715_v28, %v2372_v26  ;;  %v3952_v7 = vadd.f32 %v2716_v35, %v2382_v19 }
 0xb0f   :  { %v2381_v38 = vmul.f32 %v2715_v28, %v2370_v15  ;;  %v3948_v31 = vadd.f32 %v2716_v35, %v2380_v10  ;;  %v2722_v10 = vld [vmem:[%s4022_s17] ss:$0 sm:$0xff]  ;;  %s3241_s17 = smov [#allocation4]  }
 0xb10   :  { %v3946_v39 = vadd.f32 %v2716_v35, %v2383_v29 }
 0xb11   :  { %v3950_v42 = vadd.f32 %v2716_v35, %v2381_v38  ;;  %v2729_v35 = vld [vmem:[%s4023_s18] ss:$0 sm:$0xff]  ;;  %s2643_s18 = sshll.u32 %s3241_s17, 4  ;;  %s2644_s18 = int_to_ptr.vmem [resolvable:$true] %s2643_s18 }
 0xb12   :  { %v2396_v9 = vpack.c.bf16 %v3946_v39, %v3952_v7  ;;  %s3209_s19 = scalar_lea.vmem %s2644_s18, 512  ;;  %p3214_p1 = scmp.lt.s32.totalorder %s2644_s18, %s2644_s18 }
 0xb13   :  { %v2395_v36 = vpack.c.bf16 %v3950_v42, %v3948_v31  ;;  %p3210_p0 = scmp.ne.s32.totalorder %s2644_s18, %s3209_s19  ;;  %p3215_p2 = scmp.lt.s32.totalorder %s3209_s19, %s3209_s19 }
 0xb15   :  { %3059 = vmatprep.mubr.msk.bf16.mxu1 %vm96_vm0, %v2395_v36  ;;  %p3216_p3 = por %p3215_p2, %p3214_p1 }
 0xb16   :  { %3060 = vmatmul.mubr.msk.bf16.vlgmr.msra.gmra.mrb[76].mxu1 %vm96_vm0, %v2396_v9 }
 0xb17   :  { %p3217_p4 = pnand %p3216_p3, %p3210_p0 }
 0xbe9   :  { %v3061_v52 = vpop.f32.mrb[76].mxu1 }
 0xbea   :  { %v2469_v33 = vadd.f32 %v3061_v52, %v2717_v51  ;;  %v2460_v54 = vpop.f32.mrb[77].mxu1 }
 0xbeb   :  { %v2461_v44 = vadd.f32 %v2717_v51, %v2460_v54  ;;  %v3062_v55 = vpop.f32.mrb[78].mxu1 }
 0xbec   :  { %v2481_v56 = vmul.f32 0.044715, %v2469_v33  ;;  %v2472_v22 = vadd.f32 %v3062_v55, %v2717_v51  ;;  %v2463_v27 = vpop.f32.mrb[79].mxu1  ;;  %v2477_v63 = vmul.f32 0.5, %v2469_v33 }
 0xbed   :  { %v2479_v58 = vmul.f32 0.044715, %v2461_v44  ;;  %v2464_v59 = vadd.f32 %v2717_v51, %v2463_v27  ;;  %v2475_v25 = vmul.f32 0.5, %v2461_v44 }
 0xbee   :  { %v2485_v20 = vmul.f32 %v2481_v56, %v2469_v33  ;;  %v2482_v60 = vmul.f32 0.044715, %v2472_v22  ;;  %v2478_v21 = vmul.f32 0.5, %v2472_v22 }
 0xbef   :  { %v2483_v61 = vmul.f32 %v2479_v58, %v2461_v44  ;;  %v2480_v50 = vmul.f32 0.044715, %v2464_v59  ;;  %v2476_v28 = vmul.f32 0.5, %v2464_v59 }
 0xbf0   :  { %v2489_v41 = vmul.f32 %v2485_v20, %v2469_v33  ;;  %v2486_v62 = vmul.f32 %v2482_v60, %v2472_v22 }
 0xbf1   :  { %v2487_v0 = vmul.f32 %v2483_v61, %v2461_v44  ;;  %v2484_v1 = vmul.f32 %v2480_v50, %v2464_v59 }
 0xbf2   :  { %v2493_v2 = vadd.f32 %v2489_v41, %v2469_v33  ;;  %v2490_v3 = vmul.f32 %v2486_v62, %v2472_v22 }
 0xbf3   :  { %v2491_v4 = vadd.f32 %v2487_v0, %v2461_v44  ;;  %v2488_v6 = vmul.f32 %v2484_v1, %v2464_v59 }
 0xbf4   :  { %v2497_v49 = vmul.f32 0.7978846, %v2493_v2  ;;  %v2494_v18 = vadd.f32 %v2490_v3, %v2472_v22 }
 0xbf5   :  { %v2495_v57 = vmul.f32 0.7978846, %v2491_v4  ;;  %v2492_v8 = vadd.f32 %v2488_v6, %v2464_v59 }
 0xbf6   :  { %3197 = vtanh.f32 %v2497_v49  ;;  %v2498_v53 = vmul.f32 0.7978846, %v2494_v18 }
 0xbf7   :  { %3199 = vtanh.f32 %v2495_v57  ;;  %v2496_v11 = vmul.f32 0.7978846, %v2492_v8 }
 0xbf8   :  { %3201 = vtanh.f32 %v2498_v53 }
 0xbf9   :  { %3203 = vtanh.f32 %v2496_v11 }
 0xc00   :  { %v3198_v5 = vpop.eup %3197 }
 0xc01   :  { %v3200_v13 = vpop.eup %3199  ;;  %v2505_v17 = vadd.f32 1.0, %v3198_v5 }
 0xc02   :  { %v3202_v24 = vpop.eup %3201  ;;  %v2503_v14 = vadd.f32 1.0, %v3200_v13 }
 0xc03   :  { %v3204_v40 = vpop.eup %3203  ;;  %v2506_v23 = vadd.f32 1.0, %v3202_v24  ;;  %v2509_v12 = vmul.f32 %v2505_v17, %v2477_v63 }
 0xc04   :  { %v2504_v30 = vadd.f32 1.0, %v3204_v40  ;;  %v2507_v32 = vmul.f32 %v2503_v14, %v2475_v25 }
 0xc05   :  { %v2510_v46 = vmul.f32 %v2506_v23, %v2478_v21 }
 0xc06   :  { %v2508_v45 = vmul.f32 %v2504_v30, %v2476_v28 }
 0xc07   :  { %v2512_v47 = vpack.c.bf16 %v2510_v46, %v2509_v12 }
 0xc08   :  { %v2511_v26 = vpack.c.bf16 %v2508_v45, %v2507_v32 }
 0xc0a   :  { %3071 = vmatprep.mubr.msk.bf16.mxu0 %vm2552_vm8, %v2511_v26 }
 0xc0b   :  { %3072 = vmatmul.mubr.msk.bf16.vlgmr.msra.gmra.mrb[72].mxu0 %vm2552_vm8, %v2512_v47 }
 0xcde   :  { %v3073_v16 = vpop.f32.mrb[72].mxu0 }
 0xcdf   :  { %v2602_v15 = vadd.f32 %v3073_v16, %v2722_v10  ;;  %v2593_v19 = vpop.f32.mrb[73].mxu0 }
 0xce0   :  { %v2594_v29 = vadd.f32 %v2722_v10, %v2593_v19  ;;  %v3074_v38 = vpop.f32.mrb[74].mxu0 }
 0xce1   :  { %v2610_v36 = vadd.f32 %v2602_v15, %v3952_v7  ;;  %v2605_v9 = vadd.f32 %v3074_v38, %v2722_v10  ;;  %v2596_v43 = vpop.f32.mrb[75].mxu0 }
 0xce2   :  { %v2608_v37 = vadd.f32 %v2594_v29, %v3948_v31  ;;  %v2597_v48 = vadd.f32 %v2722_v10, %v2596_v43 }
 0xce3   :  { %v2621_v51 = vmul.f32 %v2729_v35, %v2610_v36  ;;  %v2611_v52 = vadd.f32 %v2605_v9, %v3946_v39 }
 0xce4   :  { %v2619_v33 = vmul.f32 %v2729_v35, %v2608_v37  ;;  %v2609_v54 = vadd.f32 %v2597_v48, %v3950_v42 }
 0xce5   :  { %v2632_v44 = vadd.f32 %v2730_v34, %v2621_v51  ;;  %v2622_v55 = vmul.f32 %v2729_v35, %v2611_v52 }
 0xce6   :  { %v2630_v7 = vadd.f32 %v2730_v34, %v2619_v33  ;;  %v2620_v56 = vmul.f32 %v2729_v35, %v2609_v54 }
 0xce7   :  { %2636 = vst.msk [vmem:[#allocation4 + $0x10] sm:$0xff] %vm96_vm0, %v2632_v44  ;;  %v2633_v22 = vadd.f32 %v2730_v34, %v2622_v55 }
 0xce8   :  { %2634 = vst.msk [vmem:[#allocation4] sm:$0xff] %vm96_vm0, %v2630_v7  ;;  %v2631_v27 = vadd.f32 %v2730_v34, %v2620_v56 }
 0xce9   :  { %2637 = vst.msk [vmem:[#allocation4 + $0x18] sm:$0xff] %vm96_vm0, %v2633_v22 }
 0xcea   :  { %2635 = vst.msk [vmem:[#allocation4 + $0x8] sm:$0xff] %vm96_vm0, %v2631_v27 }
 0xceb   :  { %3220 = shalt.err (!%p3217_p4)
}
 0xcec   :  { %s3221_s14 = scalar_lea.hbm %s4025_s20, 512 }
 0xced   :  { %p3222_p5 = scmp.ne.s32.totalorder %s4025_s20, %s3221_s14  ;;  %p3225_p6 = scmp.lt.u32.totalorder %s3221_s14, %s4025_s20 }
 0xcef   :  { %p3227_p7 = pnand %p3225_p6, %p3222_p5 }
 0xcf1   :  { %3230 = shalt.err (!%p3227_p7)
}
 0xcf2   :  { %s3242_s24 = smov 128  }
 0xcf3   :  { %2649 = dma.vmem_to_hbm [thread:$0]  %s2644_s18, 512, %s4025_s20, [#allocation5], %s3242_s24, %s3242_s24, %s3238_s5  }
 0xcf4   :  { %3231 = dma.done.wait [#allocation5], 512  }
 0xcf5   :  { %3232 = vsyncadd [#allocation5], 4294966784 }
 0xcf6   :  { %2653 = vsyncpa [#allocation5], 1 }

</bundles_post_ra>
